<compile_context>
chip_gen: v6e
topology: v6e:2x2x1
jax: 0.10.0
libtpu: 0.0.40
codegen_flags: <defaults>
</compile_context>

<pallas_src>
import functools

import jax
import jax.numpy as jnp
import numpy as np
from jax.experimental import pallas as pl
from jax.experimental.pallas import tpu as pltpu


# -----------------------------------------------------------------------------
# Pallas kernel.
#   emb2_ref : [T, Bg_tile, 2E]   emb2[i] = [x(t=i) | x(t=T-1-i)]    (fwd | bwd on lanes)
#   wih_ref  : [2E, 6H]           block-structured, columns = [r(2H) | z(2H) | n(2H)]
#   bih_ref  : [1, 6H]            combined biases (b_ih + b_hh for r/z; b_ih only for n)
#   wh*_ref  : [2H, 2H]           block-diagonal recurrent weights per gate (fwd ⊕ bwd)
#   bhn_ref  : [1, 2H]            n-gate recurrent bias (stays inside r*(...), per PyTorch GRU)
#   wfc_ref  : [2H, D], bfc_ref : [1, D]
# Outputs:
#   out_ref  : [T, Bg_tile, 2H]   per-step combined state [h_fwd(t=i) | h_bwd(t=T-1-i)]
#   hid_ref  : [Bg_tile, D]
# -----------------------------------------------------------------------------
def _encoder_kernel(emb2_ref, wih_ref, bih_ref, whr_ref, whz_ref, whn_ref,
                    bhn_ref, wfc_ref, bfc_ref, out_ref, hid_ref):
    T, Bg, E2 = emb2_ref.shape
    H2 = whr_ref.shape[0]                    # 2 * enc_hid (fwd | bwd packed on lanes)

    # ---- hoisted input projection: one MXU call for all timesteps / directions / gates ----
    x2d = emb2_ref[...].reshape(T * Bg, E2)                                    # [T*Bg, 2E]
    gi = jnp.dot(x2d, wih_ref[...], preferred_element_type=jnp.float32)
    gi = (gi + bih_ref[...]).reshape(T, Bg, 3 * H2)                            # [T, Bg, 6H]
    gi_r = gi[:, :, 0:H2]                    # b_ih + b_hh already folded in
    gi_z = gi[:, :, H2:2 * H2]               # b_ih + b_hh already folded in
    gi_n = gi[:, :, 2 * H2:3 * H2]           # only b_ih folded in (b_hn stays inside r*(...))

    # ---- hoist loop-invariant loads / broadcasts ----
    whr = whr_ref[...]
    whz = whz_ref[...]
    whn = whn_ref[...]
    bhn = jnp.broadcast_to(bhn_ref[...], (Bg, H2))

    # ---- interleaved fwd/bwd recurrence, fully unrolled (T is static and small) ----
    h2 = jnp.zeros((Bg, H2), jnp.float32)    # [h_fwd | h_bwd]
    for i in range(T):
        gh_r = jnp.dot(h2, whr, preferred_element_type=jnp.float32)   # 3 independent matmuls
        gh_z = jnp.dot(h2, whz, preferred_element_type=jnp.float32)   # overlap in the MXU
        gh_n = jnp.dot(h2, whn, preferred_element_type=jnp.float32) + bhn
        r = jax.nn.sigmoid(gi_r[i] + gh_r)
        z = jax.nn.sigmoid(gi_z[i] + gh_z)
        n = jnp.tanh(gi_n[i] + r * gh_n)
        h2 = (1.0 - z) * n + z * h2
        out_ref[i] = h2                      # full-slab, lane-dense store (static leading index)

    # ---- final projection: hidden = tanh(fc([h_fwd_final | h_bwd_final])) ----
    hid_ref[...] = jnp.tanh(
        jnp.dot(h2, wfc_ref[...], preferred_element_type=jnp.float32) + bfc_ref[...])


# -----------------------------------------------------------------------------
# Wrapper-side weight repacking (layout plumbing, done once per call under jit).
# Gate order inside the per-direction [*, 3H] parameters is (r, z, n), matching torch.nn.GRU.
# -----------------------------------------------------------------------------
def _pack_params(params, enc_hid):
    H = enc_hid
    wih_f, wih_b = params["wih_f"], params["wih_b"]      # [E, 3H]
    whh_f, whh_b = params["whh_f"], params["whh_b"]      # [H, 3H]
    bih_f, bih_b = params["bih_f"], params["bih_b"]      # [1, 3H]
    bhh_f, bhh_b = params["bhh_f"], params["bhh_b"]      # [1, 3H]
    E = wih_f.shape[0]

    zE = jnp.zeros((E, H), jnp.float32)
    zH = jnp.zeros((H, H), jnp.float32)

    def gate_cols(g):                                    # input-weight block for one gate: [2E, 2H]
        s = slice(g * H, (g + 1) * H)
        top = jnp.concatenate([wih_f[:, s], zE], axis=1)     # rows 0:E   -> fwd columns
        bot = jnp.concatenate([zE, wih_b[:, s]], axis=1)     # rows E:2E  -> bwd columns
        return jnp.concatenate([top, bot], axis=0)

    wih_bd = jnp.concatenate([gate_cols(0), gate_cols(1), gate_cols(2)], axis=1)   # [2E, 6H]

    def comb_bias(g, include_hh):                        # [1, 2H]  (fwd | bwd)
        s = slice(g * H, (g + 1) * H)
        bf = bih_f[:, s] + (bhh_f[:, s] if include_hh else 0.0)
        bb = bih_b[:, s] + (bhh_b[:, s] if include_hh else 0.0)
        return jnp.concatenate([bf, bb], axis=1)

    bih2 = jnp.concatenate(
        [comb_bias(0, True), comb_bias(1, True), comb_bias(2, False)], axis=1)     # [1, 6H]

    def whh_bd(g):                                       # block-diagonal recurrent weight: [2H, 2H]
        s = slice(g * H, (g + 1) * H)
        top = jnp.concatenate([whh_f[:, s], zH], axis=1)
        bot = jnp.concatenate([zH, whh_b[:, s]], axis=1)
        return jnp.concatenate([top, bot], axis=0)

    whr, whz, whn = whh_bd(0), whh_bd(1), whh_bd(2)
    bhn2 = jnp.concatenate([bhh_f[:, 2 * H:], bhh_b[:, 2 * H:]], axis=1)            # [1, 2H]
    return wih_bd, bih2, whr, whz, whn, bhn2


@functools.partial(jax.jit, static_argnames=("enc_hid", "dec_hid"))
def simple_encoder_forward(src, params, *, enc_hid, dec_hid):
    """src: int32 [S, B]  ->  (outputs [S, B, 2*enc_hid], hidden [S, dec_hid])."""
    H, D = enc_hid, dec_hid
    emb_table = params["embedding"]                         # [V, E]
    embedded = emb_table[src].astype(jnp.float32)           # glue: gather (dropout = identity)
    Bg, T, E = embedded.shape                               # Bg = S (GRU batch), T = B (GRU time)

    # Time-major + both directions packed on lanes: emb2[i] = [x(t=i) | x(t=T-1-i)].
    emb_t = jnp.transpose(embedded, (1, 0, 2))                                      # [T, Bg, E]
    emb2 = jnp.concatenate([emb_t, jnp.flip(emb_t, axis=0)], axis=-1)               # [T, Bg, 2E]

    wih_bd, bih2, whr, whz, whn, bhn2 = _pack_params(params, enc_hid)
    wfc, bfc = params["wfc"], params["bfc"]

    tile_bg = 8 if (Bg % 8 == 0) else Bg
    grid = (Bg // tile_bg,)

    in_specs = [
        pl.BlockSpec((T, tile_bg, 2 * E), lambda b: (0, b, 0)),
        pl.BlockSpec((2 * E, 6 * H), lambda b: (0, 0)),
        pl.BlockSpec((1, 6 * H), lambda b: (0, 0)),
        pl.BlockSpec((2 * H, 2 * H), lambda b: (0, 0)),
        pl.BlockSpec((2 * H, 2 * H), lambda b: (0, 0)),
        pl.BlockSpec((2 * H, 2 * H), lambda b: (0, 0)),
        pl.BlockSpec((1, 2 * H), lambda b: (0, 0)),
        pl.BlockSpec((2 * H, D), lambda b: (0, 0)),
        pl.BlockSpec((1, D), lambda b: (0, 0)),
    ]
    out_specs = (
        pl.BlockSpec((T, tile_bg, 2 * H), lambda b: (0, b, 0)),
        pl.BlockSpec((tile_bg, D), lambda b: (b, 0)),
    )

    out2, hidden = pl.pallas_call(
        _encoder_kernel,
        grid=grid,
        in_specs=in_specs,
        out_specs=out_specs,
        out_shape=(
            jax.ShapeDtypeStruct((T, Bg, 2 * H), jnp.float32),
            jax.ShapeDtypeStruct((Bg, D), jnp.float32),
        ),
        compiler_params=pltpu.CompilerParams(
            dimension_semantics=("parallel",),
        ),
    )(emb2, wih_bd, bih2, whr, whz, whn, bhn2, wfc, bfc)

    # Wrapper-side layout plumbing: split fwd/bwd, time-reverse the bwd half, restore [S, B, 2H].
    out_fwd = out2[:, :, :H]                                # [T, Bg, H], already time-ordered
    out_bwd = jnp.flip(out2[:, :, H:], axis=0)              # [T, Bg, H], now time-ordered
    outputs = jnp.transpose(jnp.concatenate([out_fwd, out_bwd], axis=-1), (1, 0, 2))
    return outputs, hidden


# -----------------------------------------------------------------------------
# Pure-JAX reference (mirrors torch.nn.GRU gate equations, gate order r,z,n).
# -----------------------------------------------------------------------------
def _ref_gru_dir(x, wih, whh, bih, bhh, reverse):
    Bg, T, _ = x.shape
    H = whh.shape[0]
    h = jnp.zeros((Bg, H), jnp.float32)
    outs = [None] * T
    order = range(T - 1, -1, -1) if reverse else range(T)
    for t in order:
        gi = x[:, t, :] @ wih + bih
        gh = h @ whh + bhh
        r = jax.nn.sigmoid(gi[:, :H] + gh[:, :H])
        z = jax.nn.sigmoid(gi[:, H:2 * H] + gh[:, H:2 * H])
        n = jnp.tanh(gi[:, 2 * H:] + r * gh[:, 2 * H:])
        h = (1.0 - z) * n + z * h
        outs[t] = h
    return jnp.stack(outs, axis=1), h


def _reference_forward(src, params):
    x = params["embedding"][src].astype(jnp.float32)
    of, hf = _ref_gru_dir(x, params["wih_f"], params["whh_f"],
                          params["bih_f"], params["bhh_f"], False)
    ob, hb = _ref_gru_dir(x, params["wih_b"], params["whh_b"],
                          params["bih_b"], params["bhh_b"], True)
    outputs = jnp.concatenate([of, ob], axis=-1)
    hidden = jnp.tanh(jnp.concatenate([hf, hb], axis=-1) @ params["wfc"] + params["bfc"])
    return outputs, hidden


def init_params(key, vocab, emb_dim, enc_hid, dec_hid):
    ks = jax.random.split(key, 12)
    k_gru = 1.0 / np.sqrt(enc_hid)
    k_fc = 1.0 / np.sqrt(2 * enc_hid)
    u = lambda k, shp, lim: jax.random.uniform(k, shp, jnp.float32, -lim, lim)
    return {
        "embedding": jax.random.normal(ks[0], (vocab, emb_dim), jnp.float32),
        # forward direction (weights stored transposed: x @ W), gate order (r, z, n)
        "wih_f": u(ks[1], (emb_dim, 3 * enc_hid), k_gru),
        "whh_f": u(ks[2], (enc_hid, 3 * enc_hid), k_gru),
        "bih_f": u(ks[3], (1, 3 * enc_hid), k_gru),
        "bhh_f": u(ks[4], (1, 3 * enc_hid), k_gru),
        # backward direction
        "wih_b": u(ks[5], (emb_dim, 3 * enc_hid), k_gru),
        "whh_b": u(ks[6], (enc_hid, 3 * enc_hid), k_gru),
        "bih_b": u(ks[7], (1, 3 * enc_hid), k_gru),
        "bhh_b": u(ks[8], (1, 3 * enc_hid), k_gru),
        # fc: Linear(2*enc_hid -> dec_hid)
        "wfc": u(ks[9], (2 * enc_hid, dec_hid), k_fc),
        "bfc": u(ks[10], (1, dec_hid), k_fc),
    }


if __name__ == "__main__":
    VOCAB, EMB, ENC_HID, DEC_HID = 50, 16, 32, 32
    SEQ_LEN, BATCH = 16, 8          # src: [seq_len, batch] as in the PyTorch forward

    key = jax.random.PRNGKey(0)
    k_src, k_par = jax.random.split(key)
    src = jax.random.randint(k_src, (SEQ_LEN, BATCH), 0, VOCAB, dtype=jnp.int32)
    params = init_params(k_par, VOCAB, EMB, ENC_HID, DEC_HID)

    outputs, hidden = simple_encoder_forward(src, params, enc_hid=ENC_HID, dec_hid=DEC_HID)
    jax.block_until_ready((outputs, hidden))

    ref_out, ref_hid = _reference_forward(src, params)
    # Tolerance accounts for MXU default-precision reassociation differences between the fused
    # (bias-folded, block-diagonal) kernel math and the straightforward reference recurrence.
    np.testing.assert_allclose(np.asarray(outputs), np.asarray(ref_out), atol=1e-3, rtol=1e-3)
    np.testing.assert_allclose(np.asarray(hidden), np.asarray(ref_hid), atol=1e-3, rtol=1e-3)

    assert outputs.shape == (SEQ_LEN, BATCH, 2 * ENC_HID)
    assert hidden.shape == (SEQ_LEN, DEC_HID)
    print("KERNEL_OK")
</pallas_src>

<mosaic_0001>
module attributes {stable_mosaic.version = 11 : i64} {
  func.func @_encoder_kernel(%arg0: i32, %arg1: memref<8x8x32xf32, #tpu.memory_space<vmem>>, %arg2: memref<32x192xf32, #tpu.memory_space<vmem>>, %arg3: memref<1x192xf32, #tpu.memory_space<vmem>>, %arg4: memref<64x64xf32, #tpu.memory_space<vmem>>, %arg5: memref<64x64xf32, #tpu.memory_space<vmem>>, %arg6: memref<64x64xf32, #tpu.memory_space<vmem>>, %arg7: memref<1x64xf32, #tpu.memory_space<vmem>>, %arg8: memref<64x32xf32, #tpu.memory_space<vmem>>, %arg9: memref<1x32xf32, #tpu.memory_space<vmem>>, %arg10: memref<8x8x64xf32, #tpu.memory_space<vmem>>, %arg11: memref<8x32xf32, #tpu.memory_space<vmem>>) attributes {dimension_semantics = [#tpu.dimension_semantics<parallel>], iteration_bounds = array<i64: 2>, scalar_prefetch = 0 : i64, scratch_operands = 0 : i64, tpu.core_type = #tpu.core_type<tc>, window_params = [{transform_indices = @transform_0, window_bounds = array<i64: 8, 8, 32>}, {pipeline_mode = #tpu.pipeline_mode<synchronous>, transform_indices = @transform_1, window_bounds = array<i64: 32, 192>}, {pipeline_mode = #tpu.pipeline_mode<synchronous>, transform_indices = @transform_2, window_bounds = array<i64: 1, 192>}, {pipeline_mode = #tpu.pipeline_mode<synchronous>, transform_indices = @transform_3, window_bounds = array<i64: 64, 64>}, {pipeline_mode = #tpu.pipeline_mode<synchronous>, transform_indices = @transform_4, window_bounds = array<i64: 64, 64>}, {pipeline_mode = #tpu.pipeline_mode<synchronous>, transform_indices = @transform_5, window_bounds = array<i64: 64, 64>}, {pipeline_mode = #tpu.pipeline_mode<synchronous>, transform_indices = @transform_6, window_bounds = array<i64: 1, 64>}, {pipeline_mode = #tpu.pipeline_mode<synchronous>, transform_indices = @transform_7, window_bounds = array<i64: 64, 32>}, {pipeline_mode = #tpu.pipeline_mode<synchronous>, transform_indices = @transform_8, window_bounds = array<i64: 1, 32>}, {transform_indices = @transform_9, window_bounds = array<i64: 8, 8, 64>}, {transform_indices = @transform_10, window_bounds = array<i64: 8, 32>}]} {
    %c0 = arith.constant 0 : index
    %c0_0 = arith.constant 0 : index
    %c0_1 = arith.constant 0 : index
    %0 = vector.load %arg1[%c0, %c0_0, %c0_1] : memref<8x8x32xf32, #tpu.memory_space<vmem>>, vector<8x8x32xf32>
    %1 = vector.shape_cast %0 : vector<8x8x32xf32> to vector<64x32xf32>
    %c0_2 = arith.constant 0 : index
    %c0_3 = arith.constant 0 : index
    %2 = vector.load %arg2[%c0_2, %c0_3] : memref<32x192xf32, #tpu.memory_space<vmem>>, vector<32x192xf32>
    %cst = arith.constant dense<0.000000e+00> : vector<64x192xf32>
    %3 = tpu.matmul %1, %2, %cst {dimension_numbers = #tpu.dot_dimension_numbers<[1], [0], [0], [1], [0, 0, 1, 1], [], []>} : vector<64x32xf32>, vector<32x192xf32>, vector<64x192xf32> -> vector<64x192xf32>
    %c0_4 = arith.constant 0 : index
    %c0_5 = arith.constant 0 : index
    %4 = vector.load %arg3[%c0_4, %c0_5] : memref<1x192xf32, #tpu.memory_space<vmem>>, vector<1x192xf32>
    %5 = vector.broadcast %4 : vector<1x192xf32> to vector<64x192xf32>
    %6 = arith.addf %3, %5 : vector<64x192xf32>
    %7 = vector.shape_cast %6 : vector<64x192xf32> to vector<8x8x192xf32>
    %8 = vector.extract_strided_slice %7 {offsets = [0, 0, 0], sizes = [8, 8, 64], strides = [1, 1, 1]} : vector<8x8x192xf32> to vector<8x8x64xf32>
    %9 = vector.extract_strided_slice %7 {offsets = [0, 0, 64], sizes = [8, 8, 64], strides = [1, 1, 1]} : vector<8x8x192xf32> to vector<8x8x64xf32>
    %10 = vector.extract_strided_slice %7 {offsets = [0, 0, 128], sizes = [8, 8, 64], strides = [1, 1, 1]} : vector<8x8x192xf32> to vector<8x8x64xf32>
    %c0_6 = arith.constant 0 : index
    %c0_7 = arith.constant 0 : index
    %11 = vector.load %arg4[%c0_6, %c0_7] : memref<64x64xf32, #tpu.memory_space<vmem>>, vector<64x64xf32>
    %c0_8 = arith.constant 0 : index
    %c0_9 = arith.constant 0 : index
    %12 = vector.load %arg5[%c0_8, %c0_9] : memref<64x64xf32, #tpu.memory_space<vmem>>, vector<64x64xf32>
    %c0_10 = arith.constant 0 : index
    %c0_11 = arith.constant 0 : index
    %13 = vector.load %arg6[%c0_10, %c0_11] : memref<64x64xf32, #tpu.memory_space<vmem>>, vector<64x64xf32>
    %c0_12 = arith.constant 0 : index
    %c0_13 = arith.constant 0 : index
    %14 = vector.load %arg7[%c0_12, %c0_13] : memref<1x64xf32, #tpu.memory_space<vmem>>, vector<1x64xf32>
    %15 = vector.shape_cast %14 : vector<1x64xf32> to vector<1x64xf32>
    %16 = vector.broadcast %15 : vector<1x64xf32> to vector<8x64xf32>
    %cst_14 = arith.constant 0.000000e+00 : f32
    %17 = vector.broadcast %cst_14 : f32 to vector<8x64xf32>
    %cst_15 = arith.constant dense<0.000000e+00> : vector<8x64xf32>
    %18 = tpu.matmul %17, %11, %cst_15 {dimension_numbers = #tpu.dot_dimension_numbers<[1], [0], [0], [1], [0, 0, 1, 1], [], []>} : vector<8x64xf32>, vector<64x64xf32>, vector<8x64xf32> -> vector<8x64xf32>
    %cst_16 = arith.constant dense<0.000000e+00> : vector<8x64xf32>
    %19 = tpu.matmul %17, %12, %cst_16 {dimension_numbers = #tpu.dot_dimension_numbers<[1], [0], [0], [1], [0, 0, 1, 1], [], []>} : vector<8x64xf32>, vector<64x64xf32>, vector<8x64xf32> -> vector<8x64xf32>
    %cst_17 = arith.constant dense<0.000000e+00> : vector<8x64xf32>
    %20 = tpu.matmul %17, %13, %cst_17 {dimension_numbers = #tpu.dot_dimension_numbers<[1], [0], [0], [1], [0, 0, 1, 1], [], []>} : vector<8x64xf32>, vector<64x64xf32>, vector<8x64xf32> -> vector<8x64xf32>
    %21 = arith.addf %20, %16 : vector<8x64xf32>
    %22 = vector.extract_strided_slice %8 {offsets = [0, 0, 0], sizes = [1, 8, 64], strides = [1, 1, 1]} : vector<8x8x64xf32> to vector<1x8x64xf32>
    %23 = vector.shape_cast %22 : vector<1x8x64xf32> to vector<8x64xf32>
    %24 = arith.addf %23, %18 : vector<8x64xf32>
    %25 = arith.negf %24 : vector<8x64xf32>
    %26 = math.exp %25 : vector<8x64xf32>
    %cst_18 = arith.constant 1.000000e+00 : f32
    %27 = vector.broadcast %cst_18 : f32 to vector<8x64xf32>
    %28 = arith.addf %27, %26 : vector<8x64xf32>
    %29 = arith.divf %27, %28 : vector<8x64xf32>
    %30 = vector.extract_strided_slice %9 {offsets = [0, 0, 0], sizes = [1, 8, 64], strides = [1, 1, 1]} : vector<8x8x64xf32> to vector<1x8x64xf32>
    %31 = vector.shape_cast %30 : vector<1x8x64xf32> to vector<8x64xf32>
    %32 = arith.addf %31, %19 : vector<8x64xf32>
    %33 = arith.negf %32 : vector<8x64xf32>
    %34 = math.exp %33 : vector<8x64xf32>
    %cst_19 = arith.constant 1.000000e+00 : f32
    %35 = vector.broadcast %cst_19 : f32 to vector<8x64xf32>
    %36 = arith.addf %35, %34 : vector<8x64xf32>
    %37 = arith.divf %35, %36 : vector<8x64xf32>
    %38 = vector.extract_strided_slice %10 {offsets = [0, 0, 0], sizes = [1, 8, 64], strides = [1, 1, 1]} : vector<8x8x64xf32> to vector<1x8x64xf32>
    %39 = vector.shape_cast %38 : vector<1x8x64xf32> to vector<8x64xf32>
    %40 = arith.mulf %29, %21 : vector<8x64xf32>
    %41 = arith.addf %39, %40 : vector<8x64xf32>
    %42 = math.tanh %41 : vector<8x64xf32>
    %cst_20 = arith.constant 1.000000e+00 : f32
    %43 = vector.broadcast %cst_20 : f32 to vector<8x64xf32>
    %44 = arith.subf %43, %37 : vector<8x64xf32>
    %45 = arith.mulf %44, %42 : vector<8x64xf32>
    %46 = arith.mulf %37, %17 : vector<8x64xf32>
    %47 = arith.addf %45, %46 : vector<8x64xf32>
    %c0_21 = arith.constant 0 : index
    %c0_22 = arith.constant 0 : index
    %c0_23 = arith.constant 0 : index
    %48 = vector.load %arg10[%c0_21, %c0_22, %c0_23] : memref<8x8x64xf32, #tpu.memory_space<vmem>>, vector<1x8x64xf32>
    %49 = vector.shape_cast %48 : vector<1x8x64xf32> to vector<8x64xf32>
    %50 = vector.shape_cast %47 : vector<8x64xf32> to vector<1x8x64xf32>
    tpu.vector_store %arg10[%c0_21, %c0_22, %c0_23], %50 {strides = array<i32>} : memref<8x8x64xf32, #tpu.memory_space<vmem>>, vector<1x8x64xf32>,
    %cst_24 = arith.constant dense<0.000000e+00> : vector<8x64xf32>
    %51 = tpu.matmul %47, %11, %cst_24 {dimension_numbers = #tpu.dot_dimension_numbers<[1], [0], [0], [1], [0, 0, 1, 1], [], []>} : vector<8x64xf32>, vector<64x64xf32>, vector<8x64xf32> -> vector<8x64xf32>
    %cst_25 = arith.constant dense<0.000000e+00> : vector<8x64xf32>
    %52 = tpu.matmul %47, %12, %cst_25 {dimension_numbers = #tpu.dot_dimension_numbers<[1], [0], [0], [1], [0, 0, 1, 1], [], []>} : vector<8x64xf32>, vector<64x64xf32>, vector<8x64xf32> -> vector<8x64xf32>
    %cst_26 = arith.constant dense<0.000000e+00> : vector<8x64xf32>
    %53 = tpu.matmul %47, %13, %cst_26 {dimension_numbers = #tpu.dot_dimension_numbers<[1], [0], [0], [1], [0, 0, 1, 1], [], []>} : vector<8x64xf32>, vector<64x64xf32>, vector<8x64xf32> -> vector<8x64xf32>
    %54 = arith.addf %53, %16 : vector<8x64xf32>
    %55 = vector.extract_strided_slice %8 {offsets = [1, 0, 0], sizes = [1, 8, 64], strides = [1, 1, 1]} : vector<8x8x64xf32> to vector<1x8x64xf32>
    %56 = vector.shape_cast %55 : vector<1x8x64xf32> to vector<8x64xf32>
    %57 = arith.addf %56, %51 : vector<8x64xf32>
    %58 = arith.negf %57 : vector<8x64xf32>
    %59 = math.exp %58 : vector<8x64xf32>
    %cst_27 = arith.constant 1.000000e+00 : f32
    %60 = vector.broadcast %cst_27 : f32 to vector<8x64xf32>
    %61 = arith.addf %60, %59 : vector<8x64xf32>
    %62 = arith.divf %60, %61 : vector<8x64xf32>
    %63 = vector.extract_strided_slice %9 {offsets = [1, 0, 0], sizes = [1, 8, 64], strides = [1, 1, 1]} : vector<8x8x64xf32> to vector<1x8x64xf32>
    %64 = vector.shape_cast %63 : vector<1x8x64xf32> to vector<8x64xf32>
    %65 = arith.addf %64, %52 : vector<8x64xf32>
    %66 = arith.negf %65 : vector<8x64xf32>
    %67 = math.exp %66 : vector<8x64xf32>
    %cst_28 = arith.constant 1.000000e+00 : f32
    %68 = vector.broadcast %cst_28 : f32 to vector<8x64xf32>
    %69 = arith.addf %68, %67 : vector<8x64xf32>
    %70 = arith.divf %68, %69 : vector<8x64xf32>
    %71 = vector.extract_strided_slice %10 {offsets = [1, 0, 0], sizes = [1, 8, 64], strides = [1, 1, 1]} : vector<8x8x64xf32> to vector<1x8x64xf32>
    %72 = vector.shape_cast %71 : vector<1x8x64xf32> to vector<8x64xf32>
    %73 = arith.mulf %62, %54 : vector<8x64xf32>
    %74 = arith.addf %72, %73 : vector<8x64xf32>
    %75 = math.tanh %74 : vector<8x64xf32>
    %cst_29 = arith.constant 1.000000e+00 : f32
    %76 = vector.broadcast %cst_29 : f32 to vector<8x64xf32>
    %77 = arith.subf %76, %70 : vector<8x64xf32>
    %78 = arith.mulf %77, %75 : vector<8x64xf32>
    %79 = arith.mulf %70, %47 : vector<8x64xf32>
    %80 = arith.addf %78, %79 : vector<8x64xf32>
    %c1 = arith.constant 1 : index
    %c0_30 = arith.constant 0 : index
    %c0_31 = arith.constant 0 : index
    %81 = vector.load %arg10[%c1, %c0_30, %c0_31] : memref<8x8x64xf32, #tpu.memory_space<vmem>>, vector<1x8x64xf32>
    %82 = vector.shape_cast %81 : vector<1x8x64xf32> to vector<8x64xf32>
    %83 = vector.shape_cast %80 : vector<8x64xf32> to vector<1x8x64xf32>
    tpu.vector_store %arg10[%c1, %c0_30, %c0_31], %83 {strides = array<i32>} : memref<8x8x64xf32, #tpu.memory_space<vmem>>, vector<1x8x64xf32>,
    %cst_32 = arith.constant dense<0.000000e+00> : vector<8x64xf32>
    %84 = tpu.matmul %80, %11, %cst_32 {dimension_numbers = #tpu.dot_dimension_numbers<[1], [0], [0], [1], [0, 0, 1, 1], [], []>} : vector<8x64xf32>, vector<64x64xf32>, vector<8x64xf32> -> vector<8x64xf32>
    %cst_33 = arith.constant dense<0.000000e+00> : vector<8x64xf32>
    %85 = tpu.matmul %80, %12, %cst_33 {dimension_numbers = #tpu.dot_dimension_numbers<[1], [0], [0], [1], [0, 0, 1, 1], [], []>} : vector<8x64xf32>, vector<64x64xf32>, vector<8x64xf32> -> vector<8x64xf32>
    %cst_34 = arith.constant dense<0.000000e+00> : vector<8x64xf32>
    %86 = tpu.matmul %80, %13, %cst_34 {dimension_numbers = #tpu.dot_dimension_numbers<[1], [0], [0], [1], [0, 0, 1, 1], [], []>} : vector<8x64xf32>, vector<64x64xf32>, vector<8x64xf32> -> vector<8x64xf32>
    %87 = arith.addf %86, %16 : vector<8x64xf32>
    %88 = vector.extract_strided_slice %8 {offsets = [2, 0, 0], sizes = [1, 8, 64], strides = [1, 1, 1]} : vector<8x8x64xf32> to vector<1x8x64xf32>
    %89 = vector.shape_cast %88 : vector<1x8x64xf32> to vector<8x64xf32>
    %90 = arith.addf %89, %84 : vector<8x64xf32>
    %91 = arith.negf %90 : vector<8x64xf32>
    %92 = math.exp %91 : vector<8x64xf32>
    %cst_35 = arith.constant 1.000000e+00 : f32
    %93 = vector.broadcast %cst_35 : f32 to vector<8x64xf32>
    %94 = arith.addf %93, %92 : vector<8x64xf32>
    %95 = arith.divf %93, %94 : vector<8x64xf32>
    %96 = vector.extract_strided_slice %9 {offsets = [2, 0, 0], sizes = [1, 8, 64], strides = [1, 1, 1]} : vector<8x8x64xf32> to vector<1x8x64xf32>
    %97 = vector.shape_cast %96 : vector<1x8x64xf32> to vector<8x64xf32>
    %98 = arith.addf %97, %85 : vector<8x64xf32>
    %99 = arith.negf %98 : vector<8x64xf32>
    %100 = math.exp %99 : vector<8x64xf32>
    %cst_36 = arith.constant 1.000000e+00 : f32
    %101 = vector.broadcast %cst_36 : f32 to vector<8x64xf32>
    %102 = arith.addf %101, %100 : vector<8x64xf32>
    %103 = arith.divf %101, %102 : vector<8x64xf32>
    %104 = vector.extract_strided_slice %10 {offsets = [2, 0, 0], sizes = [1, 8, 64], strides = [1, 1, 1]} : vector<8x8x64xf32> to vector<1x8x64xf32>
    %105 = vector.shape_cast %104 : vector<1x8x64xf32> to vector<8x64xf32>
    %106 = arith.mulf %95, %87 : vector<8x64xf32>
    %107 = arith.addf %105, %106 : vector<8x64xf32>
    %108 = math.tanh %107 : vector<8x64xf32>
    %cst_37 = arith.constant 1.000000e+00 : f32
    %109 = vector.broadcast %cst_37 : f32 to vector<8x64xf32>
    %110 = arith.subf %109, %103 : vector<8x64xf32>
    %111 = arith.mulf %110, %108 : vector<8x64xf32>
    %112 = arith.mulf %103, %80 : vector<8x64xf32>
    %113 = arith.addf %111, %112 : vector<8x64xf32>
    %c2 = arith.constant 2 : index
    %c0_38 = arith.constant 0 : index
    %c0_39 = arith.constant 0 : index
    %114 = vector.load %arg10[%c2, %c0_38, %c0_39] : memref<8x8x64xf32, #tpu.memory_space<vmem>>, vector<1x8x64xf32>
    %115 = vector.shape_cast %114 : vector<1x8x64xf32> to vector<8x64xf32>
    %116 = vector.shape_cast %113 : vector<8x64xf32> to vector<1x8x64xf32>
    tpu.vector_store %arg10[%c2, %c0_38, %c0_39], %116 {strides = array<i32>} : memref<8x8x64xf32, #tpu.memory_space<vmem>>, vector<1x8x64xf32>,
    %cst_40 = arith.constant dense<0.000000e+00> : vector<8x64xf32>
    %117 = tpu.matmul %113, %11, %cst_40 {dimension_numbers = #tpu.dot_dimension_numbers<[1], [0], [0], [1], [0, 0, 1, 1], [], []>} : vector<8x64xf32>, vector<64x64xf32>, vector<8x64xf32> -> vector<8x64xf32>
    %cst_41 = arith.constant dense<0.000000e+00> : vector<8x64xf32>
    %118 = tpu.matmul %113, %12, %cst_41 {dimension_numbers = #tpu.dot_dimension_numbers<[1], [0], [0], [1], [0, 0, 1, 1], [], []>} : vector<8x64xf32>, vector<64x64xf32>, vector<8x64xf32> -> vector<8x64xf32>
    %cst_42 = arith.constant dense<0.000000e+00> : vector<8x64xf32>
    %119 = tpu.matmul %113, %13, %cst_42 {dimension_numbers = #tpu.dot_dimension_numbers<[1], [0], [0], [1], [0, 0, 1, 1], [], []>} : vector<8x64xf32>, vector<64x64xf32>, vector<8x64xf32> -> vector<8x64xf32>
    %120 = arith.addf %119, %16 : vector<8x64xf32>
    %121 = vector.extract_strided_slice %8 {offsets = [3, 0, 0], sizes = [1, 8, 64], strides = [1, 1, 1]} : vector<8x8x64xf32> to vector<1x8x64xf32>
    %122 = vector.shape_cast %121 : vector<1x8x64xf32> to vector<8x64xf32>
    %123 = arith.addf %122, %117 : vector<8x64xf32>
    %124 = arith.negf %123 : vector<8x64xf32>
    %125 = math.exp %124 : vector<8x64xf32>
    %cst_43 = arith.constant 1.000000e+00 : f32
    %126 = vector.broadcast %cst_43 : f32 to vector<8x64xf32>
    %127 = arith.addf %126, %125 : vector<8x64xf32>
    %128 = arith.divf %126, %127 : vector<8x64xf32>
    %129 = vector.extract_strided_slice %9 {offsets = [3, 0, 0], sizes = [1, 8, 64], strides = [1, 1, 1]} : vector<8x8x64xf32> to vector<1x8x64xf32>
    %130 = vector.shape_cast %129 : vector<1x8x64xf32> to vector<8x64xf32>
    %131 = arith.addf %130, %118 : vector<8x64xf32>
    %132 = arith.negf %131 : vector<8x64xf32>
    %133 = math.exp %132 : vector<8x64xf32>
    %cst_44 = arith.constant 1.000000e+00 : f32
    %134 = vector.broadcast %cst_44 : f32 to vector<8x64xf32>
    %135 = arith.addf %134, %133 : vector<8x64xf32>
    %136 = arith.divf %134, %135 : vector<8x64xf32>
    %137 = vector.extract_strided_slice %10 {offsets = [3, 0, 0], sizes = [1, 8, 64], strides = [1, 1, 1]} : vector<8x8x64xf32> to vector<1x8x64xf32>
    %138 = vector.shape_cast %137 : vector<1x8x64xf32> to vector<8x64xf32>
    %139 = arith.mulf %128, %120 : vector<8x64xf32>
    %140 = arith.addf %138, %139 : vector<8x64xf32>
    %141 = math.tanh %140 : vector<8x64xf32>
    %cst_45 = arith.constant 1.000000e+00 : f32
    %142 = vector.broadcast %cst_45 : f32 to vector<8x64xf32>
    %143 = arith.subf %142, %136 : vector<8x64xf32>
    %144 = arith.mulf %143, %141 : vector<8x64xf32>
    %145 = arith.mulf %136, %113 : vector<8x64xf32>
    %146 = arith.addf %144, %145 : vector<8x64xf32>
    %c3 = arith.constant 3 : index
    %c0_46 = arith.constant 0 : index
    %c0_47 = arith.constant 0 : index
    %147 = vector.load %arg10[%c3, %c0_46, %c0_47] : memref<8x8x64xf32, #tpu.memory_space<vmem>>, vector<1x8x64xf32>
    %148 = vector.shape_cast %147 : vector<1x8x64xf32> to vector<8x64xf32>
    %149 = vector.shape_cast %146 : vector<8x64xf32> to vector<1x8x64xf32>
    tpu.vector_store %arg10[%c3, %c0_46, %c0_47], %149 {strides = array<i32>} : memref<8x8x64xf32, #tpu.memory_space<vmem>>, vector<1x8x64xf32>,
    %cst_48 = arith.constant dense<0.000000e+00> : vector<8x64xf32>
    %150 = tpu.matmul %146, %11, %cst_48 {dimension_numbers = #tpu.dot_dimension_numbers<[1], [0], [0], [1], [0, 0, 1, 1], [], []>} : vector<8x64xf32>, vector<64x64xf32>, vector<8x64xf32> -> vector<8x64xf32>
    %cst_49 = arith.constant dense<0.000000e+00> : vector<8x64xf32>
    %151 = tpu.matmul %146, %12, %cst_49 {dimension_numbers = #tpu.dot_dimension_numbers<[1], [0], [0], [1], [0, 0, 1, 1], [], []>} : vector<8x64xf32>, vector<64x64xf32>, vector<8x64xf32> -> vector<8x64xf32>
    %cst_50 = arith.constant dense<0.000000e+00> : vector<8x64xf32>
    %152 = tpu.matmul %146, %13, %cst_50 {dimension_numbers = #tpu.dot_dimension_numbers<[1], [0], [0], [1], [0, 0, 1, 1], [], []>} : vector<8x64xf32>, vector<64x64xf32>, vector<8x64xf32> -> vector<8x64xf32>
    %153 = arith.addf %152, %16 : vector<8x64xf32>
    %154 = vector.extract_strided_slice %8 {offsets = [4, 0, 0], sizes = [1, 8, 64], strides = [1, 1, 1]} : vector<8x8x64xf32> to vector<1x8x64xf32>
    %155 = vector.shape_cast %154 : vector<1x8x64xf32> to vector<8x64xf32>
    %156 = arith.addf %155, %150 : vector<8x64xf32>
    %157 = arith.negf %156 : vector<8x64xf32>
    %158 = math.exp %157 : vector<8x64xf32>
    %cst_51 = arith.constant 1.000000e+00 : f32
    %159 = vector.broadcast %cst_51 : f32 to vector<8x64xf32>
    %160 = arith.addf %159, %158 : vector<8x64xf32>
    %161 = arith.divf %159, %160 : vector<8x64xf32>
    %162 = vector.extract_strided_slice %9 {offsets = [4, 0, 0], sizes = [1, 8, 64], strides = [1, 1, 1]} : vector<8x8x64xf32> to vector<1x8x64xf32>
    %163 = vector.shape_cast %162 : vector<1x8x64xf32> to vector<8x64xf32>
    %164 = arith.addf %163, %151 : vector<8x64xf32>
    %165 = arith.negf %164 : vector<8x64xf32>
    %166 = math.exp %165 : vector<8x64xf32>
    %cst_52 = arith.constant 1.000000e+00 : f32
    %167 = vector.broadcast %cst_52 : f32 to vector<8x64xf32>
    %168 = arith.addf %167, %166 : vector<8x64xf32>
    %169 = arith.divf %167, %168 : vector<8x64xf32>
    %170 = vector.extract_strided_slice %10 {offsets = [4, 0, 0], sizes = [1, 8, 64], strides = [1, 1, 1]} : vector<8x8x64xf32> to vector<1x8x64xf32>
    %171 = vector.shape_cast %170 : vector<1x8x64xf32> to vector<8x64xf32>
    %172 = arith.mulf %161, %153 : vector<8x64xf32>
    %173 = arith.addf %171, %172 : vector<8x64xf32>
    %174 = math.tanh %173 : vector<8x64xf32>
    %cst_53 = arith.constant 1.000000e+00 : f32
    %175 = vector.broadcast %cst_53 : f32 to vector<8x64xf32>
    %176 = arith.subf %175, %169 : vector<8x64xf32>
    %177 = arith.mulf %176, %174 : vector<8x64xf32>
    %178 = arith.mulf %169, %146 : vector<8x64xf32>
    %179 = arith.addf %177, %178 : vector<8x64xf32>
    %c4 = arith.constant 4 : index
    %c0_54 = arith.constant 0 : index
    %c0_55 = arith.constant 0 : index
    %180 = vector.load %arg10[%c4, %c0_54, %c0_55] : memref<8x8x64xf32, #tpu.memory_space<vmem>>, vector<1x8x64xf32>
    %181 = vector.shape_cast %180 : vector<1x8x64xf32> to vector<8x64xf32>
    %182 = vector.shape_cast %179 : vector<8x64xf32> to vector<1x8x64xf32>
    tpu.vector_store %arg10[%c4, %c0_54, %c0_55], %182 {strides = array<i32>} : memref<8x8x64xf32, #tpu.memory_space<vmem>>, vector<1x8x64xf32>,
    %cst_56 = arith.constant dense<0.000000e+00> : vector<8x64xf32>
    %183 = tpu.matmul %179, %11, %cst_56 {dimension_numbers = #tpu.dot_dimension_numbers<[1], [0], [0], [1], [0, 0, 1, 1], [], []>} : vector<8x64xf32>, vector<64x64xf32>, vector<8x64xf32> -> vector<8x64xf32>
    %cst_57 = arith.constant dense<0.000000e+00> : vector<8x64xf32>
    %184 = tpu.matmul %179, %12, %cst_57 {dimension_numbers = #tpu.dot_dimension_numbers<[1], [0], [0], [1], [0, 0, 1, 1], [], []>} : vector<8x64xf32>, vector<64x64xf32>, vector<8x64xf32> -> vector<8x64xf32>
    %cst_58 = arith.constant dense<0.000000e+00> : vector<8x64xf32>
    %185 = tpu.matmul %179, %13, %cst_58 {dimension_numbers = #tpu.dot_dimension_numbers<[1], [0], [0], [1], [0, 0, 1, 1], [], []>} : vector<8x64xf32>, vector<64x64xf32>, vector<8x64xf32> -> vector<8x64xf32>
    %186 = arith.addf %185, %16 : vector<8x64xf32>
    %187 = vector.extract_strided_slice %8 {offsets = [5, 0, 0], sizes = [1, 8, 64], strides = [1, 1, 1]} : vector<8x8x64xf32> to vector<1x8x64xf32>
    %188 = vector.shape_cast %187 : vector<1x8x64xf32> to vector<8x64xf32>
    %189 = arith.addf %188, %183 : vector<8x64xf32>
    %190 = arith.negf %189 : vector<8x64xf32>
    %191 = math.exp %190 : vector<8x64xf32>
    %cst_59 = arith.constant 1.000000e+00 : f32
    %192 = vector.broadcast %cst_59 : f32 to vector<8x64xf32>
    %193 = arith.addf %192, %191 : vector<8x64xf32>
    %194 = arith.divf %192, %193 : vector<8x64xf32>
    %195 = vector.extract_strided_slice %9 {offsets = [5, 0, 0], sizes = [1, 8, 64], strides = [1, 1, 1]} : vector<8x8x64xf32> to vector<1x8x64xf32>
    %196 = vector.shape_cast %195 : vector<1x8x64xf32> to vector<8x64xf32>
    %197 = arith.addf %196, %184 : vector<8x64xf32>
    %198 = arith.negf %197 : vector<8x64xf32>
    %199 = math.exp %198 : vector<8x64xf32>
    %cst_60 = arith.constant 1.000000e+00 : f32
    %200 = vector.broadcast %cst_60 : f32 to vector<8x64xf32>
    %201 = arith.addf %200, %199 : vector<8x64xf32>
    %202 = arith.divf %200, %201 : vector<8x64xf32>
    %203 = vector.extract_strided_slice %10 {offsets = [5, 0, 0], sizes = [1, 8, 64], strides = [1, 1, 1]} : vector<8x8x64xf32> to vector<1x8x64xf32>
    %204 = vector.shape_cast %203 : vector<1x8x64xf32> to vector<8x64xf32>
    %205 = arith.mulf %194, %186 : vector<8x64xf32>
    %206 = arith.addf %204, %205 : vector<8x64xf32>
    %207 = math.tanh %206 : vector<8x64xf32>
    %cst_61 = arith.constant 1.000000e+00 : f32
    %208 = vector.broadcast %cst_61 : f32 to vector<8x64xf32>
    %209 = arith.subf %208, %202 : vector<8x64xf32>
    %210 = arith.mulf %209, %207 : vector<8x64xf32>
    %211 = arith.mulf %202, %179 : vector<8x64xf32>
    %212 = arith.addf %210, %211 : vector<8x64xf32>
    %c5 = arith.constant 5 : index
    %c0_62 = arith.constant 0 : index
    %c0_63 = arith.constant 0 : index
    %213 = vector.load %arg10[%c5, %c0_62, %c0_63] : memref<8x8x64xf32, #tpu.memory_space<vmem>>, vector<1x8x64xf32>
    %214 = vector.shape_cast %213 : vector<1x8x64xf32> to vector<8x64xf32>
    %215 = vector.shape_cast %212 : vector<8x64xf32> to vector<1x8x64xf32>
    tpu.vector_store %arg10[%c5, %c0_62, %c0_63], %215 {strides = array<i32>} : memref<8x8x64xf32, #tpu.memory_space<vmem>>, vector<1x8x64xf32>,
    %cst_64 = arith.constant dense<0.000000e+00> : vector<8x64xf32>
    %216 = tpu.matmul %212, %11, %cst_64 {dimension_numbers = #tpu.dot_dimension_numbers<[1], [0], [0], [1], [0, 0, 1, 1], [], []>} : vector<8x64xf32>, vector<64x64xf32>, vector<8x64xf32> -> vector<8x64xf32>
    %cst_65 = arith.constant dense<0.000000e+00> : vector<8x64xf32>
    %217 = tpu.matmul %212, %12, %cst_65 {dimension_numbers = #tpu.dot_dimension_numbers<[1], [0], [0], [1], [0, 0, 1, 1], [], []>} : vector<8x64xf32>, vector<64x64xf32>, vector<8x64xf32> -> vector<8x64xf32>
    %cst_66 = arith.constant dense<0.000000e+00> : vector<8x64xf32>
    %218 = tpu.matmul %212, %13, %cst_66 {dimension_numbers = #tpu.dot_dimension_numbers<[1], [0], [0], [1], [0, 0, 1, 1], [], []>} : vector<8x64xf32>, vector<64x64xf32>, vector<8x64xf32> -> vector<8x64xf32>
    %219 = arith.addf %218, %16 : vector<8x64xf32>
    %220 = vector.extract_strided_slice %8 {offsets = [6, 0, 0], sizes = [1, 8, 64], strides = [1, 1, 1]} : vector<8x8x64xf32> to vector<1x8x64xf32>
    %221 = vector.shape_cast %220 : vector<1x8x64xf32> to vector<8x64xf32>
    %222 = arith.addf %221, %216 : vector<8x64xf32>
    %223 = arith.negf %222 : vector<8x64xf32>
    %224 = math.exp %223 : vector<8x64xf32>
    %cst_67 = arith.constant 1.000000e+00 : f32
    %225 = vector.broadcast %cst_67 : f32 to vector<8x64xf32>
    %226 = arith.addf %225, %224 : vector<8x64xf32>
    %227 = arith.divf %225, %226 : vector<8x64xf32>
    %228 = vector.extract_strided_slice %9 {offsets = [6, 0, 0], sizes = [1, 8, 64], strides = [1, 1, 1]} : vector<8x8x64xf32> to vector<1x8x64xf32>
    %229 = vector.shape_cast %228 : vector<1x8x64xf32> to vector<8x64xf32>
    %230 = arith.addf %229, %217 : vector<8x64xf32>
    %231 = arith.negf %230 : vector<8x64xf32>
    %232 = math.exp %231 : vector<8x64xf32>
    %cst_68 = arith.constant 1.000000e+00 : f32
    %233 = vector.broadcast %cst_68 : f32 to vector<8x64xf32>
    %234 = arith.addf %233, %232 : vector<8x64xf32>
    %235 = arith.divf %233, %234 : vector<8x64xf32>
    %236 = vector.extract_strided_slice %10 {offsets = [6, 0, 0], sizes = [1, 8, 64], strides = [1, 1, 1]} : vector<8x8x64xf32> to vector<1x8x64xf32>
    %237 = vector.shape_cast %236 : vector<1x8x64xf32> to vector<8x64xf32>
    %238 = arith.mulf %227, %219 : vector<8x64xf32>
    %239 = arith.addf %237, %238 : vector<8x64xf32>
    %240 = math.tanh %239 : vector<8x64xf32>
    %cst_69 = arith.constant 1.000000e+00 : f32
    %241 = vector.broadcast %cst_69 : f32 to vector<8x64xf32>
    %242 = arith.subf %241, %235 : vector<8x64xf32>
    %243 = arith.mulf %242, %240 : vector<8x64xf32>
    %244 = arith.mulf %235, %212 : vector<8x64xf32>
    %245 = arith.addf %243, %244 : vector<8x64xf32>
    %c6 = arith.constant 6 : index
    %c0_70 = arith.constant 0 : index
    %c0_71 = arith.constant 0 : index
    %246 = vector.load %arg10[%c6, %c0_70, %c0_71] : memref<8x8x64xf32, #tpu.memory_space<vmem>>, vector<1x8x64xf32>
    %247 = vector.shape_cast %246 : vector<1x8x64xf32> to vector<8x64xf32>
    %248 = vector.shape_cast %245 : vector<8x64xf32> to vector<1x8x64xf32>
    tpu.vector_store %arg10[%c6, %c0_70, %c0_71], %248 {strides = array<i32>} : memref<8x8x64xf32, #tpu.memory_space<vmem>>, vector<1x8x64xf32>,
    %cst_72 = arith.constant dense<0.000000e+00> : vector<8x64xf32>
    %249 = tpu.matmul %245, %11, %cst_72 {dimension_numbers = #tpu.dot_dimension_numbers<[1], [0], [0], [1], [0, 0, 1, 1], [], []>} : vector<8x64xf32>, vector<64x64xf32>, vector<8x64xf32> -> vector<8x64xf32>
    %cst_73 = arith.constant dense<0.000000e+00> : vector<8x64xf32>
    %250 = tpu.matmul %245, %12, %cst_73 {dimension_numbers = #tpu.dot_dimension_numbers<[1], [0], [0], [1], [0, 0, 1, 1], [], []>} : vector<8x64xf32>, vector<64x64xf32>, vector<8x64xf32> -> vector<8x64xf32>
    %cst_74 = arith.constant dense<0.000000e+00> : vector<8x64xf32>
    %251 = tpu.matmul %245, %13, %cst_74 {dimension_numbers = #tpu.dot_dimension_numbers<[1], [0], [0], [1], [0, 0, 1, 1], [], []>} : vector<8x64xf32>, vector<64x64xf32>, vector<8x64xf32> -> vector<8x64xf32>
    %252 = arith.addf %251, %16 : vector<8x64xf32>
    %253 = vector.extract_strided_slice %8 {offsets = [7, 0, 0], sizes = [1, 8, 64], strides = [1, 1, 1]} : vector<8x8x64xf32> to vector<1x8x64xf32>
    %254 = vector.shape_cast %253 : vector<1x8x64xf32> to vector<8x64xf32>
    %255 = arith.addf %254, %249 : vector<8x64xf32>
    %256 = arith.negf %255 : vector<8x64xf32>
    %257 = math.exp %256 : vector<8x64xf32>
    %cst_75 = arith.constant 1.000000e+00 : f32
    %258 = vector.broadcast %cst_75 : f32 to vector<8x64xf32>
    %259 = arith.addf %258, %257 : vector<8x64xf32>
    %260 = arith.divf %258, %259 : vector<8x64xf32>
    %261 = vector.extract_strided_slice %9 {offsets = [7, 0, 0], sizes = [1, 8, 64], strides = [1, 1, 1]} : vector<8x8x64xf32> to vector<1x8x64xf32>
    %262 = vector.shape_cast %261 : vector<1x8x64xf32> to vector<8x64xf32>
    %263 = arith.addf %262, %250 : vector<8x64xf32>
    %264 = arith.negf %263 : vector<8x64xf32>
    %265 = math.exp %264 : vector<8x64xf32>
    %cst_76 = arith.constant 1.000000e+00 : f32
    %266 = vector.broadcast %cst_76 : f32 to vector<8x64xf32>
    %267 = arith.addf %266, %265 : vector<8x64xf32>
    %268 = arith.divf %266, %267 : vector<8x64xf32>
    %269 = vector.extract_strided_slice %10 {offsets = [7, 0, 0], sizes = [1, 8, 64], strides = [1, 1, 1]} : vector<8x8x64xf32> to vector<1x8x64xf32>
    %270 = vector.shape_cast %269 : vector<1x8x64xf32> to vector<8x64xf32>
    %271 = arith.mulf %260, %252 : vector<8x64xf32>
    %272 = arith.addf %270, %271 : vector<8x64xf32>
    %273 = math.tanh %272 : vector<8x64xf32>
    %cst_77 = arith.constant 1.000000e+00 : f32
    %274 = vector.broadcast %cst_77 : f32 to vector<8x64xf32>
    %275 = arith.subf %274, %268 : vector<8x64xf32>
    %276 = arith.mulf %275, %273 : vector<8x64xf32>
    %277 = arith.mulf %268, %245 : vector<8x64xf32>
    %278 = arith.addf %276, %277 : vector<8x64xf32>
    %c7 = arith.constant 7 : index
    %c0_78 = arith.constant 0 : index
    %c0_79 = arith.constant 0 : index
    %279 = vector.load %arg10[%c7, %c0_78, %c0_79] : memref<8x8x64xf32, #tpu.memory_space<vmem>>, vector<1x8x64xf32>
    %280 = vector.shape_cast %279 : vector<1x8x64xf32> to vector<8x64xf32>
    %281 = vector.shape_cast %278 : vector<8x64xf32> to vector<1x8x64xf32>
    tpu.vector_store %arg10[%c7, %c0_78, %c0_79], %281 {strides = array<i32>} : memref<8x8x64xf32, #tpu.memory_space<vmem>>, vector<1x8x64xf32>,
    %c0_80 = arith.constant 0 : index
    %c0_81 = arith.constant 0 : index
    %282 = vector.load %arg8[%c0_80, %c0_81] : memref<64x32xf32, #tpu.memory_space<vmem>>, vector<64x32xf32>
    %cst_82 = arith.constant dense<0.000000e+00> : vector<8x32xf32>
    %283 = tpu.matmul %278, %282, %cst_82 {dimension_numbers = #tpu.dot_dimension_numbers<[1], [0], [0], [1], [0, 0, 1, 1], [], []>} : vector<8x64xf32>, vector<64x32xf32>, vector<8x32xf32> -> vector<8x32xf32>
    %c0_83 = arith.constant 0 : index
    %c0_84 = arith.constant 0 : index
    %284 = vector.load %arg9[%c0_83, %c0_84] : memref<1x32xf32, #tpu.memory_space<vmem>>, vector<1x32xf32>
    %285 = vector.broadcast %284 : vector<1x32xf32> to vector<8x32xf32>
    %286 = arith.addf %283, %285 : vector<8x32xf32>
    %287 = math.tanh %286 : vector<8x32xf32>
    %c0_85 = arith.constant 0 : index
    %c0_86 = arith.constant 0 : index
    %288 = vector.load %arg11[%c0_85, %c0_86] : memref<8x32xf32, #tpu.memory_space<vmem>>, vector<8x32xf32>
    tpu.vector_store %arg11[%c0_85, %c0_86], %287 {strides = array<i32>} : memref<8x32xf32, #tpu.memory_space<vmem>>, vector<8x32xf32>,
    return
  }
  func.func @transform_0(%arg0: i32) -> (i32, i32, i32) {
    %c0_i32 = arith.constant 0 : i32
    %c0_i32_0 = arith.constant 0 : i32
    %c0_i32_1 = arith.constant 0 : i32
    return %c0_i32, %arg0, %c0_i32_0 : i32, i32, i32
  }
  func.func @transform_1(%arg0: i32) -> (i32, i32) {
    %c0_i32 = arith.constant 0 : i32
    %c0_i32_0 = arith.constant 0 : i32
    %c0_i32_1 = arith.constant 0 : i32
    return %c0_i32, %c0_i32_0 : i32, i32
  }
  func.func @transform_2(%arg0: i32) -> (i32, i32) {
    %c0_i32 = arith.constant 0 : i32
    %c0_i32_0 = arith.constant 0 : i32
    %c0_i32_1 = arith.constant 0 : i32
    return %c0_i32, %c0_i32_0 : i32, i32
  }
  func.func @transform_3(%arg0: i32) -> (i32, i32) {
    %c0_i32 = arith.constant 0 : i32
    %c0_i32_0 = arith.constant 0 : i32
    %c0_i32_1 = arith.constant 0 : i32
    return %c0_i32, %c0_i32_0 : i32, i32
  }
  func.func @transform_4(%arg0: i32) -> (i32, i32) {
    %c0_i32 = arith.constant 0 : i32
    %c0_i32_0 = arith.constant 0 : i32
    %c0_i32_1 = arith.constant 0 : i32
    return %c0_i32, %c0_i32_0 : i32, i32
  }
  func.func @transform_5(%arg0: i32) -> (i32, i32) {
    %c0_i32 = arith.constant 0 : i32
    %c0_i32_0 = arith.constant 0 : i32
    %c0_i32_1 = arith.constant 0 : i32
    return %c0_i32, %c0_i32_0 : i32, i32
  }
  func.func @transform_6(%arg0: i32) -> (i32, i32) {
    %c0_i32 = arith.constant 0 : i32
    %c0_i32_0 = arith.constant 0 : i32
    %c0_i32_1 = arith.constant 0 : i32
    return %c0_i32, %c0_i32_0 : i32, i32
  }
  func.func @transform_7(%arg0: i32) -> (i32, i32) {
    %c0_i32 = arith.constant 0 : i32
    %c0_i32_0 = arith.constant 0 : i32
    %c0_i32_1 = arith.constant 0 : i32
    return %c0_i32, %c0_i32_0 : i32, i32
  }
  func.func @transform_8(%arg0: i32) -> (i32, i32) {
    %c0_i32 = arith.constant 0 : i32
    %c0_i32_0 = arith.constant 0 : i32
    %c0_i32_1 = arith.constant 0 : i32
    return %c0_i32, %c0_i32_0 : i32, i32
  }
  func.func @transform_9(%arg0: i32) -> (i32, i32, i32) {
    %c0_i32 = arith.constant 0 : i32
    %c0_i32_0 = arith.constant 0 : i32
    %c0_i32_1 = arith.constant 0 : i32
    return %c0_i32, %arg0, %c0_i32_0 : i32, i32, i32
  }
  func.func @transform_10(%arg0: i32) -> (i32, i32) {
    %c0_i32 = arith.constant 0 : i32
    %c0_i32_0 = arith.constant 0 : i32
    return %arg0, %c0_i32 : i32, i32
  }
}

</mosaic_0001>

<bundles_post_ra>
// kernel: simple_encoder_forward.1
= control target key start
LH: loop header
LB: loop body
LE: loop exit
PB: predicated region body
PF: predicated region fallthrough
CT: control target
= control target key end

     0   :  { %s4946_s0 = inlined_call_operand.vmem [shape: f32[8,16,32], index: 0, kind: input, shape index: {}]   ;;  %s4947_s1 = inlined_call_operand.vmem [shape: f32[32,192], index: 1, kind: input, shape index: {}]   ;;  %s4948_s2 = inlined_call_operand.vmem [shape: f32[1,192], index: 2, kind: input, shape index: {}]   ;;  %s4949_s3 = inlined_call_operand.vmem [shape: f32[64,64], index: 3, kind: input, shape index: {}]   ;;  %s4950_s4 = inlined_call_operand.vmem [shape: f32[64,64], index: 4, kind: input, shape index: {}]   ;;  %s4951_s5 = inlined_call_operand.vmem [shape: f32[64,64], index: 5, kind: input, shape index: {}]   ;;  %s4952_s6 = inlined_call_operand.vmem [shape: f32[1,64], index: 6, kind: input, shape index: {}]   ;;  %s4953_s7 = inlined_call_operand.vmem [shape: f32[64,32], index: 7, kind: input, shape index: {}]   ;;  %s4954_s8 = inlined_call_operand.vmem [shape: f32[1,32], index: 8, kind: input, shape index: {}]   ;;  %s4955_s9 = inlined_call_operand.vmem [shape: f32[8,16,64], index: 9, kind: output, shape index: {0}]   ;;  %s4956_s10 = inlined_call_operand.hbm [shape: f32[16,32], index: 10, kind: output, shape index: {1}]  }
   0x1   :  { %4958 = sst [smem:[#allocation7_spill]] %s4946_s0 }
   0x2   :  { %16 = vsyncpa [#allocation5], 0 }
   0x3   :  { %18 = vsyncpa [#allocation5 + $0x1], 0  ;;  %s3908_s13 = smov 0   ;;  %s3910_s14 = smov 0  }
   0x4   :  { %s3912_s15 = smov 0   ;;  %s3914_s16 = smov 0  }
   0x5 LB: > { %s3929_s17 = sadd.s32 4294967295, %s3847_s16   ;;  %s2868_s18 = sadd.s32 4294967294, %s3847_s16   ;;  %s3847_s16 = sphi %s3914_s16, %s4967_s16   ;;  %s3843_s15 = sphi %s3912_s15, %s4966_s15   ;;  %s3839_s14 = sphi %s3910_s14, %s4965_s14   ;;  %s3835_s13 = sphi %s3908_s13, %s4964_s13  }
   0x6   : > { %s3933_s19 = sadd.s32 1, %s3847_s16   ;;  %s31_s20 = sadd.s32 1, %s3843_s15 }
   0x7   : > { %s28_s21 = ssub.s32 %s3847_s16, %s3933_s19  ;;  %p38_p0 = scmp.ne.s32.totalorder %s3843_s15, %s3839_s14 }
   0x8   : > { %p29_p1 = scmp.eq.s32.totalorder %s28_s21, 0  ;;  %p39_p2 = scmp.eq.s32.totalorder %s3847_s16, 0 }
   0x9   : > { %p236_p3 = scmp.eq.s32.totalorder %s3929_s17, 1  ;;  %p267_p4 = scmp.ne.s32.totalorder %s3839_s14, %s3835_s13 }
   0xa   : > { %s3945_s22 = scalar_select %p29_p1, %s3843_s15, %s31_s20  }
   0xb   : > { %p40_p5 = por %p39_p2, %p38_p0  ;;  %p3947_p6 = por %p236_p3, %p38_p0 }
   0xc   : > { %p268_p7 = scmp.eq.s32.totalorder %s2868_s18, 1  ;;  %p4957_p9 = scmp.ge.s32.totalorder %s3847_s16, 2 }
   0xe   : > { %p3951_p8 = por %p268_p7, %p267_p4  ;;  %308 = sbr.rel (%p4957_p9) target bundleno = 33 (0x21), region = 48 }
  0x13   : > { %311 = sbr.rel (!%p40_p5) target bundleno = 33 (0x21), region = 52  ;;  %s313_s25 = sand.u32 (%p40_p5), 1, %s3843_s15  }
  0x14   : > { %s2872_s26 = sshll.u32 (%p40_p5), %s3847_s16, 3  ;;  %s2871_s27 = sshll.u32 (%p40_p5), %s313_s25, 6 }
  0x15   : > { %s4961_s0 = sld [smem:[#allocation7_spill]] (%p40_p5)  ;;  %s315_s11 = scalar_lea.vmem (%p40_p5), [#allocation2], %s2871_s27 }
  0x1b   : > { %s317_s30 = scalar_lea.vmem %s4961_s0, %s2872_s26 }
  0x1c   : > { %v360_v0 = vld [vmem:[%s317_s30] sm:$0xff]  ;;  %v362_v1 = vld [vmem:[%s317_s30 + $0x10] sm:$0xff] }
  0x1d   : > { %v364_v2 = vld [vmem:[%s317_s30 + $0x20] sm:$0xff]  ;;  %361 = vst [vmem:[%s315_s11] sm:$0xff] %v360_v0  ;;  %363 = vst [vmem:[%s315_s11 + $0x8] sm:$0xff] %v362_v1  ;;  %v366_v3 = vld [vmem:[%s317_s30 + $0x30] sm:$0xff] }
  0x1e   : > { %365 = vst [vmem:[%s315_s11 + $0x10] sm:$0xff] %v364_v2  ;;  %v368_v4 = vld [vmem:[%s317_s30 + $0x40] sm:$0xff]  ;;  %v370_v5 = vld [vmem:[%s317_s30 + $0x50] sm:$0xff]  ;;  %367 = vst [vmem:[%s315_s11 + $0x18] sm:$0xff] %v366_v3 }
  0x1f   : > { %369 = vst [vmem:[%s315_s11 + $0x20] sm:$0xff] %v368_v4  ;;  %371 = vst [vmem:[%s315_s11 + $0x28] sm:$0xff] %v370_v5  ;;  %v372_v6 = vld [vmem:[%s317_s30 + $0x60] sm:$0xff]  ;;  %v374_v7 = vld [vmem:[%s317_s30 + $0x70] sm:$0xff] }
  0x20   : > { %373 = vst [vmem:[%s315_s11 + $0x30] sm:$0xff] %v372_v6  ;;  %375 = vst [vmem:[%s315_s11 + $0x38] sm:$0xff] %v374_v7 }
  0x21 PF: > { %p2873_p10 = scmp.ge.s32.totalorder %s3847_s16, 1  ;;  %p380_p11 = scmp.lt.s32.totalorder %s3847_s16, 3 }
  0x23   : > { %p381_p12 = pnand %p2873_p10, %p380_p11 }
  0x24   : > { %s3974_s25 = sand.u32 (!%p381_p12), 1, %s3839_s14   ;;  %s3851_s29 = smov (!%p381_p12), 64  }
  0x25   : > { %384 = sbr.rel (%p381_p12) target bundleno = 4125 (0x101d), region = 90  ;;  %s2874_s12 = sshll.u32 (!%p381_p12), %s3974_s25, 6 }
  0x26   : > { %s4027_s30 = scalar_lea.vmem (!%p381_p12), [#allocation2], %s2874_s12  ;;  %s4281_s20 = scalar_lea.vmem (!%p381_p12), [#allocation3], %s2874_s12 }
  0x2a   : > { %v3968_v8 = vld [vmem:[%s4949_s3 + $0x38] sm:$0xff]  ;;  %v3849_v10 = vmov 0.0   ;;  %v3980_v11 = vld [vmem:[%s4949_s3 + $0x30] sm:$0xff]  ;;  %v441_v13 = vld [vmem:[%s4947_s1 + $0x28] sm:$0xff]  ;;  %vm456_vm0 = vcmask 261120   ;;  %vm3850_vm1 = vmmov 0   ;;  %v446_v49 = vlaneseq }
  0x2b   : > { %v443_v9 = vld [vmem:[%s4947_s1 + $0x38] sm:$0xff]  ;;  %3163 = vmatprep.subr.mxu1 %v3849_v10  ;;  %v442_v12 = vld [vmem:[%s4947_s1 + $0x30] sm:$0xff]  ;;  %v440_v14 = vld [vmem:[%s4947_s1 + $0x20] sm:$0xff]  ;;  %545 = vmatprep.mubr.f32.mxu0 %v3849_v10  ;;  %vm625_vm2 = vcmask 523264  }
  0x2c   : > { %505 = vmatprep.subr.mxu0 %v443_v9  ;;  %3164 = vmatpush3.msra.mxu1 %v3968_v8  ;;  %v439_v15 = vld [vmem:[%s4947_s1 + $0x18] sm:$0xff]  ;;  %v4000_v16 = vld [vmem:[%s4949_s3 + $0x28] sm:$0xff]  ;;  %v438_v17 = vld [vmem:[%s4947_s1 + $0x10] sm:$0xff]  ;;  %v447_v50 = vshrl.u32 %v446_v49, 7 }
  0x2d   : > { %506 = vmatpush1.msra.mxu0 %v442_v12  ;;  %3165 = vmatprep.subr.mxu1 %v3849_v10  ;;  %v437_v18 = vld [vmem:[%s4947_s1 + $0x8] sm:$0xff]  ;;  %v4013_v19 = vld [vmem:[%s4949_s3 + $0x20] sm:$0xff]  ;;  %v4023_v21 = vld [vmem:[%s4949_s3 + $0x18] sm:$0xff] }
  0x2e   : > { %507 = vmatprep.subr.mxu0 %v441_v13  ;;  %3166 = vmatpush3.msra.mxu1 %v3980_v11  ;;  %v436_v20 = vld [vmem:[%s4947_s1] sm:$0xff]  ;;  %v4036_v23 = vld [vmem:[%s4949_s3 + $0x10] sm:$0xff]  ;;  %v4043_v24 = vld [vmem:[%s4951_s5 + $0x38] sm:$0xff]  ;;  %v448_v51 = vsub.s32 0, %v447_v50  ;;  %v452_v55 = vsub.s32 1, %v447_v50 }
  0x2f   : > { %508 = vmatpush1.msra.mxu0 %v440_v14  ;;  %3167 = vmatprep.subr.mxu1 %v3849_v10  ;;  %v428_v22 = vld [vmem:[%s4027_s30] sm:$0xff]  ;;  %v4049_v25 = vld [vmem:[%s4949_s3 + $0x8] sm:$0xff]  ;;  %v4069_v28 = vld [vmem:[%s4950_s4 + $0x38] sm:$0xff] }
  0x30   : > { %509 = vmatprep.subr.mxu0 %v439_v15  ;;  %3168 = vmatpush3.msra.mxu1 %v4000_v16  ;;  %v429_v26 = vld [vmem:[%s4027_s30 + $0x8] sm:$0xff]  ;;  %v4060_v27 = vld [vmem:[%s4949_s3] sm:$0xff]  ;;  %v4075_v29 = vld [vmem:[%s4951_s5 + $0x30] sm:$0xff] }
  0x31   : > { %510 = vmatpush1.msra.mxu0 %v438_v17  ;;  %3169 = vmatprep.subr.mxu1 %v3849_v10  ;;  %v4084_v30 = vld [vmem:[%s4950_s4 + $0x30] sm:$0xff]  ;;  %v4094_v32 = vld [vmem:[%s4950_s4 + $0x28] sm:$0xff]  ;;  %v4107_v34 = vld [vmem:[%s4950_s4 + $0x20] sm:$0xff] }
  0x32   : > { %511 = vmatprep.subr.mxu0 %v437_v18  ;;  %3170 = vmatpush3.msra.mxu1 %v4013_v19  ;;  %v430_v31 = vld [vmem:[%s4027_s30 + $0x10] sm:$0xff]  ;;  %v4099_v33 = vld [vmem:[%s4951_s5 + $0x28] sm:$0xff]  ;;  %v431_v35 = vld [vmem:[%s4027_s30 + $0x18] sm:$0xff] }
  0x33   : > { %512 = vmatpush1.msra.mxu0 %v436_v20  ;;  %3171 = vmatprep.subr.mxu1 %v3849_v10  ;;  %v4118_v36 = vld [vmem:[%s4950_s4 + $0x18] sm:$0xff]  ;;  %v4123_v37 = vld [vmem:[%s4951_s5 + $0x20] sm:$0xff]  ;;  %v4131_v38 = vld [vmem:[%s4950_s4 + $0x10] sm:$0xff] }
  0x34   : > { %3172 = vmatpush3.msra.mxu1 %v4023_v21  ;;  %2877 = vmatmul.mubr.msk.f32.vlgmr.msra.gmra.mxu0 %vm456_vm0, %v428_v22  ;;  %v432_v39 = vld [vmem:[%s4027_s30 + $0x20] sm:$0xff]  ;;  %v4142_v40 = vld [vmem:[%s4950_s4 + $0x8] sm:$0xff]  ;;  %v4149_v41 = vld [vmem:[%s4951_s5 + $0x18] sm:$0xff] }
  0x35   : > { %3173 = vmatprep.subr.mxu1 %v3849_v10  ;;  %3179 = vmatprep.mubr.msk.f32.mxu1 %vm3850_vm1, %v3849_v10  ;;  %v4155_v42 = vld [vmem:[%s4950_s4] sm:$0xff]  ;;  %v433_v43 = vld [vmem:[%s4027_s30 + $0x28] sm:$0xff]  ;;  %v4169_v44 = vld [vmem:[%s4951_s5 + $0x10] sm:$0xff] }
  0x36   : > { %3174 = vmatpush3.msra.mxu1 %v4036_v23  ;;  %3201 = vmatprep.subr.mxu0 %v3849_v10  ;;  %v434_v45 = vld [vmem:[%s4027_s30 + $0x30] sm:$0xff]  ;;  %v4180_v46 = vld [vmem:[%s4951_s5 + $0x8] sm:$0xff]  ;;  %v4189_v47 = vld [vmem:[%s4951_s5] sm:$0xff] }
  0x37   : > { %3175 = vmatprep.subr.mxu1 %v3849_v10  ;;  %3202 = vmatpush3.msra.mxu0 %v4043_v24  ;;  %v435_v48 = vld [vmem:[%s4027_s30 + $0x38] sm:$0xff]  ;;  %v444_v52 = vld [vmem:[%s4948_s2] sm:$0x3]  ;;  %s2876_s30 = sshll.u32 %s3974_s25, 3 }
  0x38   : > { %3176 = vmatpush3.msra.mxu1 %v4049_v25  ;;  %551 = vmatprep.mubr.f32.mxu0 %v3849_v10  ;;  %v449_v53 = vrot.slane %v444_v52, %v448_v51  ;;  %v453_v59 = vrot.slane %v444_v52, %v452_v55  ;;  %s427_s28 = scalar_lea.vmem [#allocation4], %s2876_s30 }
  0x39   : > { %3177 = vmatprep.subr.mxu1 %v3849_v10  ;;  %2878 = vmatmul.mubr.msk.f32.gmra.mxu0 %vm456_vm0, %v429_v26 }
  0x3a   : > { %3178 = vmatpush3.msra.mxu1 %v4060_v27  ;;  %3203 = vmatprep.subr.mxu0 %v3849_v10 }
  0x3b   : > { %3180 = vmatmul.mubr.f32.vlgmr.msra.gmra.mxu1 %v3849_v10  ;;  %3182 = vmatprep.subr.mxu1 %v3849_v10 }
  0x3c   : > { %3183 = vmatpush3.msra.mxu1 %v4069_v28  ;;  %3204 = vmatpush3.msra.mxu0 %v4075_v29 }
  0x3d   : > { %3184 = vmatprep.subr.mxu1 %v3849_v10  ;;  %557 = vmatprep.mubr.f32.mxu0 %v3849_v10 }
  0x3e   : > { %3185 = vmatpush3.msra.mxu1 %v4084_v30  ;;  %2879 = vmatmul.mubr.msk.f32.gmra.mxu0 %vm456_vm0, %v430_v31 }
  0x3f   : > { %3186 = vmatprep.subr.mxu1 %v3849_v10  ;;  %3205 = vmatprep.subr.mxu0 %v3849_v10 }
  0x40   : > { %3187 = vmatpush3.msra.mxu1 %v4094_v32  ;;  %3206 = vmatpush3.msra.mxu0 %v4099_v33 }
  0x41   : > { %3188 = vmatprep.subr.mxu1 %v3849_v10  ;;  %563 = vmatprep.mubr.f32.mxu0 %v3849_v10 }
  0x42   : > { %3189 = vmatpush3.msra.mxu1 %v4107_v34  ;;  %2880 = vmatmul.mubr.msk.f32.gmra.mxu0 %vm456_vm0, %v431_v35 }
  0x43   : > { %3190 = vmatprep.subr.mxu1 %v3849_v10  ;;  %3207 = vmatprep.subr.mxu0 %v3849_v10 }
  0x44   : > { %3191 = vmatpush3.msra.mxu1 %v4118_v36  ;;  %3208 = vmatpush3.msra.mxu0 %v4123_v37 }
  0x45   : > { %3192 = vmatprep.subr.mxu1 %v3849_v10  ;;  %569 = vmatprep.mubr.f32.mxu0 %v3849_v10 }
  0x46   : > { %3193 = vmatpush3.msra.mxu1 %v4131_v38  ;;  %2881 = vmatmul.mubr.msk.f32.gmra.mxu0 %vm456_vm0, %v432_v39 }
  0x47   : > { %3194 = vmatprep.subr.mxu1 %v3849_v10  ;;  %3198 = vmatprep.mubr.msk.f32.mxu1 %vm3850_vm1, %v3849_v10 }
  0x48   : > { %3195 = vmatpush3.msra.mxu1 %v4142_v40  ;;  %3209 = vmatprep.subr.mxu0 %v3849_v10 }
  0x49   : > { %3196 = vmatprep.subr.mxu1 %v3849_v10  ;;  %3210 = vmatpush3.msra.mxu0 %v4149_v41 }
  0x4a   : > { %3197 = vmatpush3.msra.mxu1 %v4155_v42  ;;  %575 = vmatprep.mubr.f32.mxu0 %v3849_v10 }
  0x4b   : > { %3199 = vmatmul.mubr.f32.vlgmr.msra.gmra.mxu1 %v3849_v10  ;;  %2882 = vmatmul.mubr.msk.f32.gmra.mxu0 %vm456_vm0, %v433_v43 }
  0x4c   : > { %3211 = vmatprep.subr.mxu0 %v3849_v10  ;;  %581 = vmatprep.mubr.f32.mxu0 %v3849_v10 }
  0x4d   : > { %3212 = vmatpush3.msra.mxu0 %v4169_v44  ;;  %3220 = vmatprep.subr.mxu1 %v3849_v10 }
  0x4e   : > { %3213 = vmatprep.subr.mxu0 %v3849_v10  ;;  %3221 = vmatpush3.msra.mxu1 %v3968_v8 }
  0x4f   : > { %2883 = vmatmul.mubr.msk.f32.gmra.mxu0 %vm456_vm0, %v434_v45  ;;  %3222 = vmatprep.subr.mxu1 %v3849_v10 }
  0x50   : > { %3214 = vmatpush3.msra.mxu0 %v4180_v46  ;;  %587 = vmatprep.mubr.f32.mxu0 %v3849_v10 }
  0x51   : > { %3215 = vmatprep.subr.mxu0 %v3849_v10  ;;  %3223 = vmatpush3.msra.mxu1 %v3980_v11 }
  0x52   : > { %3216 = vmatpush3.msra.mxu0 %v4189_v47  ;;  %3224 = vmatprep.subr.mxu1 %v3849_v10 }
  0x53   : > { %2884 = vmatmul.mubr.msk.f32.gmra.mxu0 %vm456_vm0, %v435_v48  ;;  %3239 = vmatprep.subr.mxu0 %v3849_v10 }
  0x54   : > { %3217 = vmatprep.mubr.msk.f32.mxu0 %vm3850_vm1, %v3849_v10  ;;  %3225 = vmatpush3.msra.mxu1 %v4000_v16 }
  0x55   : > { %3226 = vmatprep.subr.mxu1 %v3849_v10  ;;  %3236 = vmatprep.mubr.msk.f32.mxu1 %vm3850_vm1, %v3849_v10 }
  0x56   : > { %3227 = vmatpush3.msra.mxu1 %v4013_v19 }
  0x57   : > { %3218 = vmatmul.mubr.f32.vlgmr.msra.gmra.mxu0 %v3849_v10  ;;  %3228 = vmatprep.subr.mxu1 %v3849_v10 }
  0x58   : > { %3240 = vmatpush3.msra.mxu0 %v4069_v28  ;;  %3229 = vmatpush3.msra.mxu1 %v4023_v21 }
  0x59   : > { %3241 = vmatprep.subr.mxu0 %v3849_v10  ;;  %3230 = vmatprep.subr.mxu1 %v3849_v10 }
  0x5a   : > { %3242 = vmatpush3.msra.mxu0 %v4084_v30  ;;  %3231 = vmatpush3.msra.mxu1 %v4036_v23 }
  0x5b   : > { %3243 = vmatprep.subr.mxu0 %v3849_v10  ;;  %3232 = vmatprep.subr.mxu1 %v3849_v10 }
  0x5c   : > { %3244 = vmatpush3.msra.mxu0 %v4094_v32  ;;  %3233 = vmatpush3.msra.mxu1 %v4049_v25 }
  0x5d   : > { %3245 = vmatprep.subr.mxu0 %v3849_v10  ;;  %3234 = vmatprep.subr.mxu1 %v3849_v10 }
  0x5e   : > { %3246 = vmatpush3.msra.mxu0 %v4107_v34  ;;  %3235 = vmatpush3.msra.mxu1 %v4060_v27 }
  0x5f   : > { %3247 = vmatprep.subr.mxu0 %v3849_v10  ;;  %3255 = vmatprep.mubr.msk.f32.mxu0 %vm3850_vm1, %v3849_v10 }
  0x60   : > { %3248 = vmatpush3.msra.mxu0 %v4118_v36  ;;  %3258 = vmatprep.subr.mxu1 %v3849_v10 }
  0x61   : > { %3249 = vmatprep.subr.mxu0 %v3849_v10 }
  0x62   : > { %3250 = vmatpush3.msra.mxu0 %v4131_v38 }
  0x63   : > { %3251 = vmatprep.subr.mxu0 %v3849_v10 }
  0x64   : > { %3252 = vmatpush3.msra.mxu0 %v4142_v40 }
  0x65   : > { %3253 = vmatprep.subr.mxu0 %v3849_v10 }
  0x66   : > { %3254 = vmatpush3.msra.mxu0 %v4155_v42 }
  0x67   : > { %3277 = vmatprep.subr.mxu0 %v3849_v10 }
  0xf4   : > { %v547_v54 = vpop.f32.mrf.mxu0 }
  0xf5   : > { %v548_v57 = vadd.f32 %v547_v54, %v449_v53 }
  0xf6   : > { %v549_v56 = vpop.f32.mrf.mxu0 }
  0xf9   : > { %v553_v58 = vpop.f32.mrf.mxu0 }
  0xfa   : > { %v4239_v60 = vadd.f32 %v553_v58, %v449_v53 }
  0xfb   : > { %v695_v61 = vpop.f32.mrf.mxu1  ;;  %v555_v62 = vpop.f32.mrf.mxu0 }
  0xfc   : > { %v839_v63 = vadd.f32 %v695_v61, %v548_v57  ;;  %v4241_v0 = vadd.f32 %v555_v62, %v453_v59  ;;  %v4271_v61 = vld [vmem:[%s4952_s6] ss:$0 sm:$0xff] }
  0xfd   : > { %v3181_v1 = vpop.f32.mrf.mxu1 }
  0xfe   : > { %v2886_v2 = vmul.f32 -1.442695, %v839_v63  ;;  %v559_v3 = vpop.f32.mrf.mxu0 }
  0xff   : > { %v4243_v4 = vadd.f32 %v559_v3, %v449_v53  ;;  %v550_v3 = vadd.f32 %v549_v56, %v453_v59 }
 0x100   : > { %3680 = vpow2.f32 %v2886_v2  ;;  %v561_v5 = vpop.f32.mrf.mxu0 }
 0x101   : > { %v4245_v6 = vadd.f32 %v561_v5, %v453_v59 }
 0x102   : > { %v565_v7 = vpop.f32.mrf.mxu0 }
 0x103   : > { %v4247_v9 = vadd.f32 %v565_v7, %v449_v53 }
 0x104   : > { %v567_v12 = vpop.f32.mrf.mxu0 }
 0x105   : > { %v4249_v13 = vadd.f32 %v567_v12, %v453_v59 }
 0x106   : > { %v571_v14 = vpop.f32.mrf.mxu0 }
 0x107   : > { %v4251_v15 = vadd.f32 %v571_v14, %v449_v53 }
 0x108   : > { %v573_v17 = vpop.f32.mrf.mxu0 }
 0x109   : > { %v4253_v18 = vadd.f32 %v573_v17, %v453_v59 }
 0x10b   : > { %v765_v20 = vpop.f32.mrf.mxu1  ;;  %v577_v22 = vpop.f32.mrf.mxu0 }
 0x10c   : > { %847 = vrot.lane.b32.xlu0 %v765_v20, %s3851_s29  ;;  %v4256_v26 = vadd.f32 %v577_v22, %v449_v53 }
 0x10d   : > { %v3681_v31 = vpop.eup %3680  ;;  %v3200_v35 = vpop.f32.mrf.mxu1 }
 0x10e   : > { %v579_v39 = vpop.f32.mrf.mxu0  ;;  %v843_v43 = vadd.f32 1.0, %v3681_v31 }
 0x10f   : > { %v4258_v45 = vadd.f32 %v579_v39, %v453_v59 }
 0x110   : > { %v583_v48 = vpop.f32.mrf.mxu0  ;;  %3682 = vrcp.f32 %v843_v43 }
 0x111   : > { %v4260_v49 = vadd.f32 %v583_v48, %v449_v53 }
 0x112   : > { %v585_v50 = vpop.f32.mrf.mxu0 }
 0x113   : > { %v4262_v51 = vadd.f32 %v585_v50, %v453_v59 }
 0x114   : > { %v589_v52 = vpop.f32.mrf.mxu0 }
 0x115   : > { %v4264_v54 = vadd.f32 %v589_v52, %v449_v53 }
 0x116   : > { %v591_v55 = vpop.f32.mrf.mxu0 }
 0x117   : > { %v4266_v58 = vadd.f32 %v591_v55, %v453_v59 }
 0x118   : > { %v835_v62 = vpop.f32.mrf.mxu0 }
 0x119   : > { %v836_v1 = vadd.f32 %v4271_v61, %v835_v62 }
 0x11a   : > { %v3219_v63 = vpop.f32.mrf.mxu0 }
 0x11d   : > { %v3683_v2 = vpop.eup %3682 }
 0x11e   : > { %v857_v5 = vmul.f32 %v3683_v2, %v836_v1 }
 0x120   : > { %v858_v7 = vadd.f32 %v857_v5, %v550_v3 }
 0x122   : > { %3684 = vtanh.f32 %v858_v7 }
 0x12f   : > { %v3685_v12 = vpop.eup %3684 }
 0x130   : > { %862 = vrot.lane.b32.xlu0 %v3685_v12, %s3851_s29 }
 0x17e   : > { %v848_v53 = vpop.permute.xlu0 %847 }
 0x17f   : > { %v850_v14 = vadd.f32 %v848_v53, %v548_v57 }
 0x181   : > { %v2887_v17 = vmul.f32 -1.442695, %v850_v14 }
 0x183   : > { %3686 = vpow2.f32 %v2887_v17 }
 0x190   : > { %v3687_v20 = vpop.eup %3686 }
 0x191   : > { %v854_v22 = vadd.f32 1.0, %v3687_v20 }
 0x193   : > { %3688 = vrcp.f32 %v854_v22 }
 0x1a0   : > { %v3689_v31 = vpop.eup %3688 }
 0x1a1   : > { %v860_v35 = vsub.f32 1.0, %v3689_v31  ;;  %v866_v48 = vmul.f32 0.0, %v3689_v31 }
 0x1a2   : > { %v863_v39 = vpop.permute.xlu0 %862 }
 0x1a3   : > { %v865_v43 = vmul.f32 %v863_v39, %v860_v35 }
 0x1a5   : > { %v4275_v56 = vadd.f32 %v866_v48, %v865_v43 }
 0x1a7   : > { %869 = vrot.lane.b32.xlu1 %v4275_v56, %s3851_s29 }
 0x219   : > { %v870_v59 = vpop.permute.xlu1 %869 }
 0x21a   : > { %872 = vst.msk [vmem:[%s4281_s20] sm:$0xff] %vm625_vm2, %v870_v59  ;;  %3237 = vmatmul.mubr.msk.f32.vlgmr.msra.gmra.mxu1 %vm625_vm2, %v870_v59  ;;  %3256 = vmatmul.mubr.msk.f32.vlgmr.msra.gmra.mxu0 %vm625_vm2, %v870_v59 }
 0x21b   : > { %3259 = vmatpush3.msra.mxu1 %v4043_v24  ;;  %3274 = vmatprep.mubr.msk.f32.mxu1 %vm3850_vm1, %v3849_v10 }
 0x21c   : > { %3260 = vmatprep.subr.mxu1 %v3849_v10  ;;  %3278 = vmatpush3.msra.mxu0 %v3968_v8 }
 0x21d   : > { %3261 = vmatpush3.msra.mxu1 %v4075_v29  ;;  %3279 = vmatprep.subr.mxu0 %v3849_v10 }
 0x21e   : > { %3262 = vmatprep.subr.mxu1 %v3849_v10  ;;  %3280 = vmatpush3.msra.mxu0 %v3980_v11 }
 0x21f   : > { %3263 = vmatpush3.msra.mxu1 %v4099_v33  ;;  %3281 = vmatprep.subr.mxu0 %v3849_v10 }
 0x220   : > { %3264 = vmatprep.subr.mxu1 %v3849_v10  ;;  %3282 = vmatpush3.msra.mxu0 %v4000_v16 }
 0x221   : > { %3265 = vmatpush3.msra.mxu1 %v4123_v37  ;;  %3283 = vmatprep.subr.mxu0 %v3849_v10 }
 0x222   : > { %3266 = vmatprep.subr.mxu1 %v3849_v10  ;;  %3284 = vmatpush3.msra.mxu0 %v4013_v19 }
 0x223   : > { %3267 = vmatpush3.msra.mxu1 %v4149_v41  ;;  %3285 = vmatprep.subr.mxu0 %v3849_v10 }
 0x224   : > { %3268 = vmatprep.subr.mxu1 %v3849_v10  ;;  %3286 = vmatpush3.msra.mxu0 %v4023_v21 }
 0x225   : > { %3269 = vmatpush3.msra.mxu1 %v4169_v44  ;;  %3287 = vmatprep.subr.mxu0 %v3849_v10 }
 0x226   : > { %3270 = vmatprep.subr.mxu1 %v3849_v10  ;;  %3288 = vmatpush3.msra.mxu0 %v4036_v23 }
 0x227   : > { %3271 = vmatpush3.msra.mxu1 %v4180_v46  ;;  %3289 = vmatprep.subr.mxu0 %v3849_v10 }
 0x228   : > { %3272 = vmatprep.subr.mxu1 %v3849_v10  ;;  %3290 = vmatpush3.msra.mxu0 %v4049_v25 }
 0x229   : > { %3273 = vmatpush3.msra.mxu1 %v4189_v47  ;;  %3291 = vmatprep.subr.mxu0 %v3849_v10 }
 0x22a   : > { %3275 = vmatmul.mubr.msk.f32.vlgmr.msra.gmra.mxu1 %vm625_vm2, %v870_v59  ;;  %3296 = vmatprep.subr.mxu1 %v3849_v10 }
 0x22b   : > { %3297 = vmatpush3.msra.mxu1 %v4069_v28  ;;  %3292 = vmatpush3.msra.mxu0 %v4060_v27 }
 0x22c   : > { %3298 = vmatprep.subr.mxu1 %v3849_v10  ;;  %3293 = vmatprep.mubr.msk.f32.mxu0 %vm3850_vm1, %v3849_v10 }
 0x22d   : > { %3299 = vmatpush3.msra.mxu1 %v4084_v30  ;;  %3312 = vmatprep.mubr.msk.f32.mxu1 %vm3850_vm1, %v3849_v10 }
 0x22e   : > { %3300 = vmatprep.subr.mxu1 %v3849_v10  ;;  %3315 = vmatprep.subr.mxu0 %v3849_v10 }
 0x22f   : > { %3301 = vmatpush3.msra.mxu1 %v4094_v32 }
 0x230   : > { %3302 = vmatprep.subr.mxu1 %v3849_v10 }
 0x231   : > { %3303 = vmatpush3.msra.mxu1 %v4107_v34 }
 0x232   : > { %3304 = vmatprep.subr.mxu1 %v3849_v10 }
 0x233   : > { %3305 = vmatpush3.msra.mxu1 %v4118_v36 }
 0x234   : > { %3306 = vmatprep.subr.mxu1 %v3849_v10 }
 0x235   : > { %3307 = vmatpush3.msra.mxu1 %v4131_v38 }
 0x236   : > { %3308 = vmatprep.subr.mxu1 %v3849_v10 }
 0x237   : > { %3309 = vmatpush3.msra.mxu1 %v4142_v40 }
 0x238   : > { %3310 = vmatprep.subr.mxu1 %v3849_v10 }
 0x239   : > { %3311 = vmatpush3.msra.mxu1 %v4155_v42 }
 0x23a   : > { %3334 = vmatprep.subr.mxu1 %v3849_v10 }
 0x2da   : > { %v941_v57 = vpop.f32.mrf.mxu1  ;;  %v1011_v50 = vpop.f32.mrf.mxu0 }
 0x2db   : > { %v1085_v52 = vadd.f32 %v941_v57, %v4239_v60  ;;  %1093 = vrot.lane.b32.xlu1 %v1011_v50, %s3851_s29 }
 0x2dc   : > { %v3238_v55 = vpop.f32.mrf.mxu1  ;;  %v3257_v62 = vpop.f32.mrf.mxu0 }
 0x2dd   : > { %v2891_v63 = vmul.f32 -1.442695, %v1085_v52 }
 0x2df   : > { %3690 = vpow2.f32 %v2891_v63 }
 0x2ea   : > { %v1081_v1 = vpop.f32.mrf.mxu1 }
 0x2eb   : > { %v1082_v7 = vadd.f32 %v4271_v61, %v1081_v1 }
 0x2ec   : > { %v3691_v2 = vpop.eup %3690  ;;  %v3276_v3 = vpop.f32.mrf.mxu1 }
 0x2ed   : > { %v1089_v5 = vadd.f32 1.0, %v3691_v2 }
 0x2ef   : > { %3692 = vrcp.f32 %v1089_v5 }
 0x2fc   : > { %v3693_v12 = vpop.eup %3692 }
 0x2fd   : > { %v1103_v53 = vmul.f32 %v3693_v12, %v1082_v7 }
 0x2ff   : > { %v1104_v14 = vadd.f32 %v1103_v53, %v4241_v0 }
 0x301   : > { %3694 = vtanh.f32 %v1104_v14 }
 0x30e   : > { %v3695_v17 = vpop.eup %3694 }
 0x30f   : > { %1108 = vrot.lane.b32.xlu0 %v3695_v17, %s3851_s29 }
 0x34d   : > { %v1094_v20 = vpop.permute.xlu1 %1093 }
 0x34e   : > { %v1096_v22 = vadd.f32 %v1094_v20, %v4239_v60 }
 0x350   : > { %v2892_v31 = vmul.f32 -1.442695, %v1096_v22 }
 0x352   : > { %3696 = vpow2.f32 %v2892_v31 }
 0x35f   : > { %v3697_v35 = vpop.eup %3696 }
 0x360   : > { %v1100_v39 = vadd.f32 1.0, %v3697_v35 }
 0x362   : > { %3698 = vrcp.f32 %v1100_v39 }
 0x36f   : > { %v3699_v43 = vpop.eup %3698 }
 0x370   : > { %v1106_v48 = vsub.f32 1.0, %v3699_v43  ;;  %v1112_v57 = vmul.f32 %v3699_v43, %v4275_v56 }
 0x381   : > { %v1109_v59 = vpop.permute.xlu0 %1108 }
 0x382   : > { %v1111_v50 = vmul.f32 %v1109_v59, %v1106_v48 }
 0x384   : > { %v4349_v0 = vadd.f32 %v1112_v57, %v1111_v50 }
 0x386   : > { %1115 = vrot.lane.b32.xlu1 %v4349_v0, %s3851_s29 }
 0x3f8   : > { %v1116_v52 = vpop.permute.xlu1 %1115 }
 0x3f9   : > { %2893 = vst.msk [vmem:[%s4281_s20 + $0x8] sm:$0xff] %vm625_vm2, %v1116_v52  ;;  %3294 = vmatmul.mubr.msk.f32.vlgmr.msra.gmra.mxu0 %vm625_vm2, %v1116_v52  ;;  %3313 = vmatmul.mubr.msk.f32.vlgmr.msra.gmra.mxu1 %vm625_vm2, %v1116_v52 }
 0x3fa   : > { %3316 = vmatpush3.msra.mxu0 %v4043_v24  ;;  %3331 = vmatprep.mubr.msk.f32.mxu0 %vm3850_vm1, %v3849_v10 }
 0x3fb   : > { %3317 = vmatprep.subr.mxu0 %v3849_v10  ;;  %3335 = vmatpush3.msra.mxu1 %v3968_v8 }
 0x3fc   : > { %3318 = vmatpush3.msra.mxu0 %v4075_v29  ;;  %3336 = vmatprep.subr.mxu1 %v3849_v10 }
 0x3fd   : > { %3319 = vmatprep.subr.mxu0 %v3849_v10  ;;  %3337 = vmatpush3.msra.mxu1 %v3980_v11 }
 0x3fe   : > { %3320 = vmatpush3.msra.mxu0 %v4099_v33  ;;  %3338 = vmatprep.subr.mxu1 %v3849_v10 }
 0x3ff   : > { %3321 = vmatprep.subr.mxu0 %v3849_v10  ;;  %3339 = vmatpush3.msra.mxu1 %v4000_v16 }
 0x400   : > { %3322 = vmatpush3.msra.mxu0 %v4123_v37  ;;  %3340 = vmatprep.subr.mxu1 %v3849_v10 }
 0x401   : > { %3323 = vmatprep.subr.mxu0 %v3849_v10  ;;  %3341 = vmatpush3.msra.mxu1 %v4013_v19 }
 0x402   : > { %3324 = vmatpush3.msra.mxu0 %v4149_v41  ;;  %3342 = vmatprep.subr.mxu1 %v3849_v10 }
 0x403   : > { %3325 = vmatprep.subr.mxu0 %v3849_v10  ;;  %3343 = vmatpush3.msra.mxu1 %v4023_v21 }
 0x404   : > { %3326 = vmatpush3.msra.mxu0 %v4169_v44  ;;  %3344 = vmatprep.subr.mxu1 %v3849_v10 }
 0x405   : > { %3327 = vmatprep.subr.mxu0 %v3849_v10  ;;  %3345 = vmatpush3.msra.mxu1 %v4036_v23 }
 0x406   : > { %3328 = vmatpush3.msra.mxu0 %v4180_v46  ;;  %3346 = vmatprep.subr.mxu1 %v3849_v10 }
 0x407   : > { %3329 = vmatprep.subr.mxu0 %v3849_v10  ;;  %3347 = vmatpush3.msra.mxu1 %v4049_v25 }
 0x408   : > { %3330 = vmatpush3.msra.mxu0 %v4189_v47  ;;  %3348 = vmatprep.subr.mxu1 %v3849_v10 }
 0x409   : > { %3332 = vmatmul.mubr.msk.f32.vlgmr.msra.gmra.mxu0 %vm625_vm2, %v1116_v52  ;;  %3353 = vmatprep.subr.mxu0 %v3849_v10 }
 0x40a   : > { %3354 = vmatpush3.msra.mxu0 %v4069_v28  ;;  %3349 = vmatpush3.msra.mxu1 %v4060_v27 }
 0x40b   : > { %3355 = vmatprep.subr.mxu0 %v3849_v10  ;;  %3350 = vmatprep.mubr.msk.f32.mxu1 %vm3850_vm1, %v3849_v10 }
 0x40c   : > { %3356 = vmatpush3.msra.mxu0 %v4084_v30  ;;  %3369 = vmatprep.mubr.msk.f32.mxu0 %vm3850_vm1, %v3849_v10 }
 0x40d   : > { %3357 = vmatprep.subr.mxu0 %v3849_v10  ;;  %3372 = vmatprep.subr.mxu1 %v3849_v10 }
 0x40e   : > { %3358 = vmatpush3.msra.mxu0 %v4094_v32 }
 0x40f   : > { %3359 = vmatprep.subr.mxu0 %v3849_v10 }
 0x410   : > { %3360 = vmatpush3.msra.mxu0 %v4107_v34 }
 0x411   : > { %3361 = vmatprep.subr.mxu0 %v3849_v10 }
 0x412   : > { %3362 = vmatpush3.msra.mxu0 %v4118_v36 }
 0x413   : > { %3363 = vmatprep.subr.mxu0 %v3849_v10 }
 0x414   : > { %3364 = vmatpush3.msra.mxu0 %v4131_v38 }
 0x415   : > { %3365 = vmatprep.subr.mxu0 %v3849_v10 }
 0x416   : > { %3366 = vmatpush3.msra.mxu0 %v4142_v40 }
 0x417   : > { %3367 = vmatprep.subr.mxu0 %v3849_v10 }
 0x418   : > { %3368 = vmatpush3.msra.mxu0 %v4155_v42 }
 0x419   : > { %3391 = vmatprep.subr.mxu0 %v3849_v10 }
 0x4b9   : > { %v1188_v60 = vpop.f32.mrf.mxu0  ;;  %v1258_v56 = vpop.f32.mrf.mxu1 }
 0x4ba   : > { %v1332_v55 = vadd.f32 %v1188_v60, %v4243_v4  ;;  %1340 = vrot.lane.b32.xlu0 %v1258_v56, %s3851_s29 }
 0x4bb   : > { %v3295_v62 = vpop.f32.mrf.mxu0  ;;  %v3314_v63 = vpop.f32.mrf.mxu1 }
 0x4bc   : > { %v2897_v1 = vmul.f32 -1.442695, %v1332_v55 }
 0x4be   : > { %3700 = vpow2.f32 %v2897_v1 }
 0x4c9   : > { %v1328_v2 = vpop.f32.mrf.mxu0 }
 0x4ca   : > { %v1329_v12 = vadd.f32 %v4271_v61, %v1328_v2 }
 0x4cb   : > { %v3701_v3 = vpop.eup %3700  ;;  %v3333_v5 = vpop.f32.mrf.mxu0 }
 0x4cc   : > { %v1336_v7 = vadd.f32 1.0, %v3701_v3 }
 0x4ce   : > { %3702 = vrcp.f32 %v1336_v7 }
 0x4db   : > { %v3703_v53 = vpop.eup %3702 }
 0x4dc   : > { %v1350_v14 = vmul.f32 %v3703_v53, %v1329_v12 }
 0x4de   : > { %v1351_v17 = vadd.f32 %v1350_v14, %v4245_v6 }
 0x4e0   : > { %3704 = vtanh.f32 %v1351_v17 }
 0x4ed   : > { %v3705_v20 = vpop.eup %3704 }
 0x4ee   : > { %1355 = vrot.lane.b32.xlu1 %v3705_v20, %s3851_s29 }
 0x52c   : > { %v1341_v22 = vpop.permute.xlu0 %1340 }
 0x52d   : > { %v1343_v31 = vadd.f32 %v1341_v22, %v4243_v4 }
 0x52f   : > { %v2898_v35 = vmul.f32 -1.442695, %v1343_v31 }
 0x531   : > { %3706 = vpow2.f32 %v2898_v35 }
 0x53e   : > { %v3707_v39 = vpop.eup %3706 }
 0x53f   : > { %v1347_v43 = vadd.f32 1.0, %v3707_v39 }
 0x541   : > { %3708 = vrcp.f32 %v1347_v43 }
 0x54e   : > { %v3709_v48 = vpop.eup %3708 }
 0x54f   : > { %v1353_v59 = vsub.f32 1.0, %v3709_v48  ;;  %v1359_v52 = vmul.f32 %v3709_v48, %v4349_v0 }
 0x560   : > { %v1356_v57 = vpop.permute.xlu1 %1355 }
 0x561   : > { %v1358_v50 = vmul.f32 %v1356_v57, %v1353_v59 }
 0x563   : > { %v4419_v6 = vadd.f32 %v1359_v52, %v1358_v50 }
 0x565   : > { %1362 = vrot.lane.b32.xlu0 %v4419_v6, %s3851_s29 }
 0x5d7   : > { %v1363_v60 = vpop.permute.xlu0 %1362 }
 0x5d8   : > { %2899 = vst.msk [vmem:[%s4281_s20 + $0x10] sm:$0xff] %vm625_vm2, %v1363_v60  ;;  %3351 = vmatmul.mubr.msk.f32.vlgmr.msra.gmra.mxu1 %vm625_vm2, %v1363_v60  ;;  %3370 = vmatmul.mubr.msk.f32.vlgmr.msra.gmra.mxu0 %vm625_vm2, %v1363_v60 }
 0x5d9   : > { %3373 = vmatpush3.msra.mxu1 %v4043_v24  ;;  %3388 = vmatprep.mubr.msk.f32.mxu1 %vm3850_vm1, %v3849_v10 }
 0x5da   : > { %3374 = vmatprep.subr.mxu1 %v3849_v10  ;;  %3392 = vmatpush3.msra.mxu0 %v3968_v8 }
 0x5db   : > { %3375 = vmatpush3.msra.mxu1 %v4075_v29  ;;  %3393 = vmatprep.subr.mxu0 %v3849_v10 }
 0x5dc   : > { %3376 = vmatprep.subr.mxu1 %v3849_v10  ;;  %3394 = vmatpush3.msra.mxu0 %v3980_v11 }
 0x5dd   : > { %3377 = vmatpush3.msra.mxu1 %v4099_v33  ;;  %3395 = vmatprep.subr.mxu0 %v3849_v10 }
 0x5de   : > { %3378 = vmatprep.subr.mxu1 %v3849_v10  ;;  %3396 = vmatpush3.msra.mxu0 %v4000_v16 }
 0x5df   : > { %3379 = vmatpush3.msra.mxu1 %v4123_v37  ;;  %3397 = vmatprep.subr.mxu0 %v3849_v10 }
 0x5e0   : > { %3380 = vmatprep.subr.mxu1 %v3849_v10  ;;  %3398 = vmatpush3.msra.mxu0 %v4013_v19 }
 0x5e1   : > { %3381 = vmatpush3.msra.mxu1 %v4149_v41  ;;  %3399 = vmatprep.subr.mxu0 %v3849_v10 }
 0x5e2   : > { %3382 = vmatprep.subr.mxu1 %v3849_v10  ;;  %3400 = vmatpush3.msra.mxu0 %v4023_v21 }
 0x5e3   : > { %3383 = vmatpush3.msra.mxu1 %v4169_v44  ;;  %3401 = vmatprep.subr.mxu0 %v3849_v10 }
 0x5e4   : > { %3384 = vmatprep.subr.mxu1 %v3849_v10  ;;  %3402 = vmatpush3.msra.mxu0 %v4036_v23 }
 0x5e5   : > { %3385 = vmatpush3.msra.mxu1 %v4180_v46  ;;  %3403 = vmatprep.subr.mxu0 %v3849_v10 }
 0x5e6   : > { %3386 = vmatprep.subr.mxu1 %v3849_v10  ;;  %3404 = vmatpush3.msra.mxu0 %v4049_v25 }
 0x5e7   : > { %3387 = vmatpush3.msra.mxu1 %v4189_v47  ;;  %3405 = vmatprep.subr.mxu0 %v3849_v10 }
 0x5e8   : > { %3389 = vmatmul.mubr.msk.f32.vlgmr.msra.gmra.mxu1 %vm625_vm2, %v1363_v60  ;;  %3410 = vmatprep.subr.mxu1 %v3849_v10 }
 0x5e9   : > { %3411 = vmatpush3.msra.mxu1 %v4069_v28  ;;  %3406 = vmatpush3.msra.mxu0 %v4060_v27 }
 0x5ea   : > { %3412 = vmatprep.subr.mxu1 %v3849_v10  ;;  %3407 = vmatprep.mubr.msk.f32.mxu0 %vm3850_vm1, %v3849_v10 }
 0x5eb   : > { %3413 = vmatpush3.msra.mxu1 %v4084_v30  ;;  %3426 = vmatprep.mubr.msk.f32.mxu1 %vm3850_vm1, %v3849_v10 }
 0x5ec   : > { %3414 = vmatprep.subr.mxu1 %v3849_v10  ;;  %3429 = vmatprep.subr.mxu0 %v3849_v10 }
 0x5ed   : > { %3415 = vmatpush3.msra.mxu1 %v4094_v32 }
 0x5ee   : > { %3416 = vmatprep.subr.mxu1 %v3849_v10 }
 0x5ef   : > { %3417 = vmatpush3.msra.mxu1 %v4107_v34 }
 0x5f0   : > { %3418 = vmatprep.subr.mxu1 %v3849_v10 }
 0x5f1   : > { %3419 = vmatpush3.msra.mxu1 %v4118_v36 }
 0x5f2   : > { %3420 = vmatprep.subr.mxu1 %v3849_v10 }
 0x5f3   : > { %3421 = vmatpush3.msra.mxu1 %v4131_v38 }
 0x5f4   : > { %3422 = vmatprep.subr.mxu1 %v3849_v10 }
 0x5f5   : > { %3423 = vmatpush3.msra.mxu1 %v4142_v40 }
 0x5f6   : > { %3424 = vmatprep.subr.mxu1 %v3849_v10 }
 0x5f7   : > { %3425 = vmatpush3.msra.mxu1 %v4155_v42 }
 0x5f8   : > { %3448 = vmatprep.subr.mxu1 %v3849_v10 }
 0x698   : > { %v1435_v8 = vpop.f32.mrf.mxu1  ;;  %v1505_v11 = vpop.f32.mrf.mxu0 }
 0x699   : > { %v1579_v4 = vadd.f32 %v1435_v8, %v4247_v9  ;;  %1587 = vrot.lane.b32.xlu1 %v1505_v11, %s3851_s29  ;;  %v4590_v11 = vld [vmem:[%s4951_s5 + $0x30] sm:$0xff] }
 0x69a   : > { %v3352_v0 = vpop.f32.mrf.mxu1  ;;  %v3371_v56 = vpop.f32.mrf.mxu0 }
 0x69b   : > { %v2903_v55 = vmul.f32 -1.442695, %v1579_v4  ;;  %v4599_v4 = vld [vmem:[%s4951_s5 + $0x28] sm:$0xff]  ;;  %v4613_v56 = vld [vmem:[%s4951_s5 + $0x20] sm:$0xff] }
 0x69c   : > { %v4607_v0 = vld [vmem:[%s4949_s3 + $0x28] sm:$0xff] }
 0x69d   : > { %3710 = vpow2.f32 %v2903_v55  ;;  %v4621_v55 = vld [vmem:[%s4949_s3 + $0x20] sm:$0xff] }
 0x6a8   : > { %v1575_v62 = vpop.f32.mrf.mxu1 }
 0x6a9   : > { %v1576_v3 = vadd.f32 %v4271_v61, %v1575_v62  ;;  %v4627_v62 = vld [vmem:[%s4951_s5 + $0x18] sm:$0xff] }
 0x6aa   : > { %v3711_v63 = vpop.eup %3710  ;;  %v3390_v1 = vpop.f32.mrf.mxu1 }
 0x6ab   : > { %v1583_v2 = vadd.f32 1.0, %v3711_v63  ;;  %v4635_v63 = vld [vmem:[%s4949_s3 + $0x18] sm:$0xff]  ;;  %v4641_v1 = vld [vmem:[%s4951_s5 + $0x10] sm:$0xff] }
 0x6ad   : > { %3712 = vrcp.f32 %v1583_v2  ;;  %v4649_v2 = vld [vmem:[%s4949_s3 + $0x10] sm:$0xff] }
 0x6ba   : > { %v3713_v5 = vpop.eup %3712 }
 0x6bb   : > { %v1597_v7 = vmul.f32 %v3713_v5, %v1576_v3  ;;  %v4655_v3 = vld [vmem:[%s4951_s5 + $0x8] sm:$0xff] }
 0x6bc   : > { %v4663_v5 = vld [vmem:[%s4949_s3 + $0x8] sm:$0xff] }
 0x6bd   : > { %v1598_v12 = vadd.f32 %v1597_v7, %v4249_v13  ;;  %v4669_v7 = vld [vmem:[%s4951_s5] sm:$0xff] }
 0x6bf   : > { %3714 = vtanh.f32 %v1598_v12  ;;  %v4678_v12 = vld [vmem:[%s4950_s4 + $0x38] sm:$0xff] }
 0x6cc   : > { %v3715_v53 = vpop.eup %3714 }
 0x6cd   : > { %1602 = vrot.lane.b32.xlu0 %v3715_v53, %s3851_s29  ;;  %v4684_v53 = vld [vmem:[%s4949_s3] sm:$0xff] }
 0x70b   : > { %v1588_v14 = vpop.permute.xlu1 %1587 }
 0x70c   : > { %v1590_v17 = vadd.f32 %v1588_v14, %v4247_v9  ;;  %v4504_v9 = vld [vmem:[%s4949_s3 + $0x38] sm:$0xff]  ;;  %v4693_v14 = vld [vmem:[%s4950_s4 + $0x30] sm:$0xff] }
 0x70e   : > { %v2904_v20 = vmul.f32 -1.442695, %v1590_v17  ;;  %v4703_v17 = vld [vmem:[%s4950_s4 + $0x28] sm:$0xff] }
 0x710   : > { %3716 = vpow2.f32 %v2904_v20  ;;  %v4710_v20 = vld [vmem:[%s4950_s4 + $0x20] sm:$0xff] }
 0x71d   : > { %v3717_v22 = vpop.eup %3716 }
 0x71e   : > { %v1594_v31 = vadd.f32 1.0, %v3717_v22  ;;  %v4717_v22 = vld [vmem:[%s4950_s4 + $0x18] sm:$0xff] }
 0x720   : > { %3718 = vrcp.f32 %v1594_v31  ;;  %v4724_v31 = vld [vmem:[%s4950_s4 + $0x10] sm:$0xff] }
 0x72d   : > { %v3719_v35 = vpop.eup %3718 }
 0x72e   : > { %v1600_v39 = vsub.f32 1.0, %v3719_v35  ;;  %v1606_v48 = vmul.f32 %v3719_v35, %v4419_v6  ;;  %v4731_v35 = vld [vmem:[%s4950_s4 + $0x8] sm:$0xff] }
 0x73f   : > { %v1603_v43 = vpop.permute.xlu0 %1602 }
 0x740   : > { %v1605_v59 = vmul.f32 %v1603_v43, %v1600_v39  ;;  %v4738_v39 = vld [vmem:[%s4950_s4] sm:$0xff] }
 0x742   : > { %v4489_v13 = vadd.f32 %v1606_v48, %v1605_v59 }
 0x744   : > { %1609 = vrot.lane.b32.xlu1 %v4489_v13, %s3851_s29 }
 0x7b6   : > { %v1610_v57 = vpop.permute.xlu1 %1609 }
 0x7b7   : > { %2905 = vst.msk [vmem:[%s4281_s20 + $0x18] sm:$0xff] %vm625_vm2, %v1610_v57  ;;  %3408 = vmatmul.mubr.msk.f32.vlgmr.msra.gmra.mxu0 %vm625_vm2, %v1610_v57  ;;  %3427 = vmatmul.mubr.msk.f32.vlgmr.msra.gmra.mxu1 %vm625_vm2, %v1610_v57 }
 0x7b8   : > { %3430 = vmatpush3.msra.mxu0 %v4043_v24  ;;  %3445 = vmatprep.mubr.msk.f32.mxu0 %vm3850_vm1, %v3849_v10  ;;  %v4513_v24 = vld [vmem:[%s4949_s3 + $0x30] sm:$0xff] }
 0x7b9   : > { %3431 = vmatprep.subr.mxu0 %v3849_v10  ;;  %3449 = vmatpush3.msra.mxu1 %v4504_v9 }
 0x7ba   : > { %3432 = vmatpush3.msra.mxu0 %v4075_v29  ;;  %3450 = vmatprep.subr.mxu1 %v3849_v10 }
 0x7bb   : > { %3433 = vmatprep.subr.mxu0 %v3849_v10  ;;  %3451 = vmatpush3.msra.mxu1 %v4513_v24 }
 0x7bc   : > { %3434 = vmatpush3.msra.mxu0 %v4099_v33  ;;  %3452 = vmatprep.subr.mxu1 %v3849_v10 }
 0x7bd   : > { %3435 = vmatprep.subr.mxu0 %v3849_v10  ;;  %3453 = vmatpush3.msra.mxu1 %v4000_v16 }
 0x7be   : > { %3436 = vmatpush3.msra.mxu0 %v4123_v37  ;;  %3454 = vmatprep.subr.mxu1 %v3849_v10 }
 0x7bf   : > { %3437 = vmatprep.subr.mxu0 %v3849_v10  ;;  %3455 = vmatpush3.msra.mxu1 %v4013_v19 }
 0x7c0   : > { %3438 = vmatpush3.msra.mxu0 %v4149_v41  ;;  %3456 = vmatprep.subr.mxu1 %v3849_v10 }
 0x7c1   : > { %3439 = vmatprep.subr.mxu0 %v3849_v10  ;;  %3457 = vmatpush3.msra.mxu1 %v4023_v21 }
 0x7c2   : > { %3440 = vmatpush3.msra.mxu0 %v4169_v44  ;;  %3458 = vmatprep.subr.mxu1 %v3849_v10 }
 0x7c3   : > { %3441 = vmatprep.subr.mxu0 %v3849_v10  ;;  %3459 = vmatpush3.msra.mxu1 %v4036_v23 }
 0x7c4   : > { %3442 = vmatpush3.msra.mxu0 %v4180_v46  ;;  %3460 = vmatprep.subr.mxu1 %v3849_v10 }
 0x7c5   : > { %3443 = vmatprep.subr.mxu0 %v3849_v10  ;;  %3461 = vmatpush3.msra.mxu1 %v4049_v25 }
 0x7c6   : > { %3444 = vmatpush3.msra.mxu0 %v4189_v47  ;;  %3462 = vmatprep.subr.mxu1 %v3849_v10 }
 0x7c7   : > { %3446 = vmatmul.mubr.msk.f32.vlgmr.msra.gmra.mxu0 %vm625_vm2, %v1610_v57  ;;  %3467 = vmatprep.subr.mxu0 %v3849_v10 }
 0x7c8   : > { %3468 = vmatpush3.msra.mxu0 %v4069_v28  ;;  %3463 = vmatpush3.msra.mxu1 %v4060_v27 }
 0x7c9   : > { %3469 = vmatprep.subr.mxu0 %v3849_v10  ;;  %3464 = vmatprep.mubr.msk.f32.mxu1 %vm3850_vm1, %v3849_v10 }
 0x7ca   : > { %3470 = vmatpush3.msra.mxu0 %v4084_v30  ;;  %3483 = vmatprep.mubr.msk.f32.mxu0 %vm3850_vm1, %v3849_v10 }
 0x7cb   : > { %3471 = vmatprep.subr.mxu0 %v3849_v10  ;;  %3486 = vmatprep.subr.mxu1 %v3849_v10 }
 0x7cc   : > { %3472 = vmatpush3.msra.mxu0 %v4094_v32 }
 0x7cd   : > { %3473 = vmatprep.subr.mxu0 %v3849_v10 }
 0x7ce   : > { %3474 = vmatpush3.msra.mxu0 %v4107_v34 }
 0x7cf   : > { %3475 = vmatprep.subr.mxu0 %v3849_v10 }
 0x7d0   : > { %3476 = vmatpush3.msra.mxu0 %v4118_v36 }
 0x7d1   : > { %3477 = vmatprep.subr.mxu0 %v3849_v10 }
 0x7d2   : > { %3478 = vmatpush3.msra.mxu0 %v4131_v38 }
 0x7d3   : > { %3479 = vmatprep.subr.mxu0 %v3849_v10 }
 0x7d4   : > { %3480 = vmatpush3.msra.mxu0 %v4142_v40 }
 0x7d5   : > { %3481 = vmatprep.subr.mxu0 %v3849_v10 }
 0x7d6   : > { %3482 = vmatpush3.msra.mxu0 %v4155_v42 }
 0x7d7   : > { %3505 = vmatprep.subr.mxu0 %v3849_v10 }
 0x877   : > { %v1682_v16 = vpop.f32.mrf.mxu0  ;;  %v1752_v19 = vpop.f32.mrf.mxu1 }
 0x878   : > { %v1826_v21 = vadd.f32 %v1682_v16, %v4251_v15  ;;  %1834 = vrot.lane.b32.xlu0 %v1752_v19, %s3851_s29 }
 0x879   : > { %v3409_v23 = vpop.f32.mrf.mxu0  ;;  %v3428_v25 = vpop.f32.mrf.mxu1 }
 0x87a   : > { %v2909_v27 = vmul.f32 -1.442695, %v1826_v21 }
 0x87c   : > { %3720 = vpow2.f32 %v2909_v27 }
 0x887   : > { %v1822_v28 = vpop.f32.mrf.mxu0 }
 0x888   : > { %v1823_v33 = vadd.f32 %v4271_v61, %v1822_v28 }
 0x889   : > { %v3721_v29 = vpop.eup %3720  ;;  %v3447_v30 = vpop.f32.mrf.mxu0 }
 0x88a   : > { %v1830_v32 = vadd.f32 1.0, %v3721_v29 }
 0x88c   : > { %3722 = vrcp.f32 %v1830_v32 }
 0x899   : > { %v3723_v34 = vpop.eup %3722 }
 0x89a   : > { %v1844_v36 = vmul.f32 %v3723_v34, %v1823_v33 }
 0x89c   : > { %v1845_v37 = vadd.f32 %v1844_v36, %v4253_v18 }
 0x89e   : > { %3724 = vtanh.f32 %v1845_v37 }
 0x8ab   : > { %v3725_v38 = vpop.eup %3724 }
 0x8ac   : > { %1849 = vrot.lane.b32.xlu1 %v3725_v38, %s3851_s29 }
 0x8ea   : > { %v1835_v40 = vpop.permute.xlu0 %1834 }
 0x8eb   : > { %v1837_v41 = vadd.f32 %v1835_v40, %v4251_v15  ;;  %v4580_v15 = vld [vmem:[%s4951_s5 + $0x38] sm:$0xff] }
 0x8ed   : > { %v2910_v42 = vmul.f32 -1.442695, %v1837_v41 }
 0x8ef   : > { %3726 = vpow2.f32 %v2910_v42 }
 0x8fc   : > { %v3727_v44 = vpop.eup %3726 }
 0x8fd   : > { %v1841_v46 = vadd.f32 1.0, %v3727_v44 }
 0x8ff   : > { %3728 = vrcp.f32 %v1841_v46 }
 0x90c   : > { %v3729_v47 = vpop.eup %3728 }
 0x90d   : > { %v1847_v50 = vsub.f32 1.0, %v3729_v47  ;;  %v1853_v60 = vmul.f32 %v3729_v47, %v4489_v13 }
 0x91e   : > { %v1850_v52 = vpop.permute.xlu1 %1849 }
 0x91f   : > { %v1852_v6 = vmul.f32 %v1850_v52, %v1847_v50 }
 0x921   : > { %v4569_v18 = vadd.f32 %v1853_v60, %v1852_v6 }
 0x923   : > { %1856 = vrot.lane.b32.xlu0 %v4569_v18, %s3851_s29 }
 0x995   : > { %v1857_v8 = vpop.permute.xlu0 %1856 }
 0x996   : > { %2911 = vst.msk [vmem:[%s4281_s20 + $0x20] sm:$0xff] %vm625_vm2, %v1857_v8  ;;  %3465 = vmatmul.mubr.msk.f32.vlgmr.msra.gmra.mxu1 %vm625_vm2, %v1857_v8  ;;  %3484 = vmatmul.mubr.msk.f32.vlgmr.msra.gmra.mxu0 %vm625_vm2, %v1857_v8 }
 0x997   : > { %3487 = vmatpush3.msra.mxu1 %v4580_v15  ;;  %3502 = vmatprep.mubr.msk.f32.mxu1 %vm3850_vm1, %v3849_v10 }
 0x998   : > { %3488 = vmatprep.subr.mxu1 %v3849_v10  ;;  %3506 = vmatpush3.msra.mxu0 %v4504_v9 }
 0x999   : > { %3489 = vmatpush3.msra.mxu1 %v4590_v11  ;;  %3507 = vmatprep.subr.mxu0 %v3849_v10 }
 0x99a   : > { %3490 = vmatprep.subr.mxu1 %v3849_v10  ;;  %3508 = vmatpush3.msra.mxu0 %v4513_v24 }
 0x99b   : > { %3491 = vmatpush3.msra.mxu1 %v4599_v4  ;;  %3509 = vmatprep.subr.mxu0 %v3849_v10 }
 0x99c   : > { %3492 = vmatprep.subr.mxu1 %v3849_v10  ;;  %3510 = vmatpush3.msra.mxu0 %v4607_v0 }
 0x99d   : > { %3493 = vmatpush3.msra.mxu1 %v4613_v56  ;;  %3511 = vmatprep.subr.mxu0 %v3849_v10 }
 0x99e   : > { %3494 = vmatprep.subr.mxu1 %v3849_v10  ;;  %3512 = vmatpush3.msra.mxu0 %v4621_v55 }
 0x99f   : > { %3495 = vmatpush3.msra.mxu1 %v4627_v62  ;;  %3513 = vmatprep.subr.mxu0 %v3849_v10 }
 0x9a0   : > { %3496 = vmatprep.subr.mxu1 %v3849_v10  ;;  %3514 = vmatpush3.msra.mxu0 %v4635_v63 }
 0x9a1   : > { %3497 = vmatpush3.msra.mxu1 %v4641_v1  ;;  %3515 = vmatprep.subr.mxu0 %v3849_v10 }
 0x9a2   : > { %3498 = vmatprep.subr.mxu1 %v3849_v10  ;;  %3516 = vmatpush3.msra.mxu0 %v4649_v2 }
 0x9a3   : > { %3499 = vmatpush3.msra.mxu1 %v4655_v3  ;;  %3517 = vmatprep.subr.mxu0 %v3849_v10 }
 0x9a4   : > { %3500 = vmatprep.subr.mxu1 %v3849_v10  ;;  %3518 = vmatpush3.msra.mxu0 %v4663_v5 }
 0x9a5   : > { %3501 = vmatpush3.msra.mxu1 %v4669_v7  ;;  %3519 = vmatprep.subr.mxu0 %v3849_v10 }
 0x9a6   : > { %3503 = vmatmul.mubr.msk.f32.vlgmr.msra.gmra.mxu1 %vm625_vm2, %v1857_v8  ;;  %3524 = vmatprep.subr.mxu1 %v3849_v10 }
 0x9a7   : > { %3525 = vmatpush3.msra.mxu1 %v4678_v12  ;;  %3520 = vmatpush3.msra.mxu0 %v4684_v53 }
 0x9a8   : > { %3526 = vmatprep.subr.mxu1 %v3849_v10  ;;  %3521 = vmatprep.mubr.msk.f32.mxu0 %vm3850_vm1, %v3849_v10 }
 0x9a9   : > { %3527 = vmatpush3.msra.mxu1 %v4693_v14  ;;  %3540 = vmatprep.mubr.msk.f32.mxu1 %vm3850_vm1, %v3849_v10 }
 0x9aa   : > { %3528 = vmatprep.subr.mxu1 %v3849_v10  ;;  %3543 = vmatprep.subr.mxu0 %v3849_v10 }
 0x9ab   : > { %3529 = vmatpush3.msra.mxu1 %v4703_v17 }
 0x9ac   : > { %3530 = vmatprep.subr.mxu1 %v3849_v10 }
 0x9ad   : > { %3531 = vmatpush3.msra.mxu1 %v4710_v20 }
 0x9ae   : > { %3532 = vmatprep.subr.mxu1 %v3849_v10 }
 0x9af   : > { %3533 = vmatpush3.msra.mxu1 %v4717_v22 }
 0x9b0   : > { %3534 = vmatprep.subr.mxu1 %v3849_v10 }
 0x9b1   : > { %3535 = vmatpush3.msra.mxu1 %v4724_v31 }
 0x9b2   : > { %3536 = vmatprep.subr.mxu1 %v3849_v10 }
 0x9b3   : > { %3537 = vmatpush3.msra.mxu1 %v4731_v35 }
 0x9b4   : > { %3538 = vmatprep.subr.mxu1 %v3849_v10 }
 0x9b5   : > { %3539 = vmatpush3.msra.mxu1 %v4738_v39 }
 0x9b6   : > { %3562 = vmatprep.subr.mxu1 %v3849_v10 }
 0xa56   : > { %v1929_v43 = vpop.f32.mrf.mxu1  ;;  %v1999_v48 = vpop.f32.mrf.mxu0 }
 0xa57   : > { %v2073_v59 = vadd.f32 %v1929_v43, %v4256_v26  ;;  %2081 = vrot.lane.b32.xlu1 %v1999_v48, %s3851_s29 }
 0xa58   : > { %v3466_v13 = vpop.f32.mrf.mxu1  ;;  %v3485_v57 = vpop.f32.mrf.mxu0 }
 0xa59   : > { %v2915_v16 = vmul.f32 -1.442695, %v2073_v59 }
 0xa5b   : > { %3730 = vpow2.f32 %v2915_v16 }
 0xa66   : > { %v2069_v19 = vpop.f32.mrf.mxu1 }
 0xa67   : > { %v2070_v27 = vadd.f32 %v4271_v61, %v2069_v19 }
 0xa68   : > { %v3731_v21 = vpop.eup %3730  ;;  %v3504_v23 = vpop.f32.mrf.mxu1 }
 0xa69   : > { %v2077_v25 = vadd.f32 1.0, %v3731_v21  ;;  %v2609_v23 = vld [vmem:[%s4953_s7 + $0x38] sm:$0xff] }
 0xa6b   : > { %3732 = vrcp.f32 %v2077_v25  ;;  %v2608_v25 = vld [vmem:[%s4953_s7 + $0x30] sm:$0xff] }
 0xa78   : > { %v3733_v28 = vpop.eup %3732 }
 0xa79   : > { %v2091_v29 = vmul.f32 %v3733_v28, %v2070_v27  ;;  %v2607_v27 = vld [vmem:[%s4953_s7 + $0x28] sm:$0xff]  ;;  %v2605_v28 = vld [vmem:[%s4953_s7 + $0x18] sm:$0xff] }
 0xa7b   : > { %v2092_v30 = vadd.f32 %v2091_v29, %v4258_v45 }
 0xa7d   : > { %3734 = vtanh.f32 %v2092_v30  ;;  %v2604_v30 = vld [vmem:[%s4953_s7 + $0x10] sm:$0xff] }
 0xa8a   : > { %v3735_v32 = vpop.eup %3734 }
 0xa8b   : > { %2096 = vrot.lane.b32.xlu0 %v3735_v32, %s3851_s29  ;;  %v2603_v32 = vld [vmem:[%s4953_s7 + $0x8] sm:$0xff] }
 0xac9   : > { %v2082_v33 = vpop.permute.xlu1 %2081 }
 0xaca   : > { %v2084_v34 = vadd.f32 %v2082_v33, %v4256_v26  ;;  %v2602_v33 = vld [vmem:[%s4953_s7] sm:$0xff] }
 0xacc   : > { %v2916_v36 = vmul.f32 -1.442695, %v2084_v34 }
 0xace   : > { %3736 = vpow2.f32 %v2916_v36 }
 0xadb   : > { %v3737_v37 = vpop.eup %3736 }
 0xadc   : > { %v2088_v38 = vadd.f32 1.0, %v3737_v37 }
 0xade   : > { %3738 = vrcp.f32 %v2088_v38 }
 0xaeb   : > { %v3739_v40 = vpop.eup %3738 }
 0xaec   : > { %v2094_v41 = vsub.f32 1.0, %v3739_v40  ;;  %v2100_v42 = vmul.f32 %v3739_v40, %v4569_v18 }
 0xafd   : > { %v2097_v61 = vpop.permute.xlu0 %2096 }
 0xafe   : > { %v2099_v44 = vmul.f32 %v2097_v61, %v2094_v41 }
 0xb00   : > { %v4749_v45 = vadd.f32 %v2100_v42, %v2099_v44 }
 0xb02   : > { %2103 = vrot.lane.b32.xlu1 %v4749_v45, %s3851_s29 }
 0xb74   : > { %v2104_v46 = vpop.permute.xlu1 %2103 }
 0xb75   : > { %2917 = vst.msk [vmem:[%s4281_s20 + $0x28] sm:$0xff] %vm625_vm2, %v2104_v46  ;;  %3522 = vmatmul.mubr.msk.f32.vlgmr.msra.gmra.mxu0 %vm625_vm2, %v2104_v46  ;;  %3541 = vmatmul.mubr.msk.f32.vlgmr.msra.gmra.mxu1 %vm625_vm2, %v2104_v46 }
 0xb76   : > { %3544 = vmatpush3.msra.mxu0 %v4580_v15  ;;  %3559 = vmatprep.mubr.msk.f32.mxu0 %vm3850_vm1, %v3849_v10 }
 0xb77   : > { %3545 = vmatprep.subr.mxu0 %v3849_v10  ;;  %3563 = vmatpush3.msra.mxu1 %v4504_v9 }
 0xb78   : > { %3546 = vmatpush3.msra.mxu0 %v4590_v11  ;;  %3564 = vmatprep.subr.mxu1 %v3849_v10 }
 0xb79   : > { %3547 = vmatprep.subr.mxu0 %v3849_v10  ;;  %3565 = vmatpush3.msra.mxu1 %v4513_v24 }
 0xb7a   : > { %3548 = vmatpush3.msra.mxu0 %v4599_v4  ;;  %3566 = vmatprep.subr.mxu1 %v3849_v10 }
 0xb7b   : > { %3549 = vmatprep.subr.mxu0 %v3849_v10  ;;  %3567 = vmatpush3.msra.mxu1 %v4607_v0  ;;  %v3786_v0 = vld [vmem:[%s4952_s6] ss:$0 sm:$0xff] }
 0xb7c   : > { %3550 = vmatpush3.msra.mxu0 %v4613_v56  ;;  %3568 = vmatprep.subr.mxu1 %v3849_v10 }
 0xb7d   : > { %3551 = vmatprep.subr.mxu0 %v3849_v10  ;;  %3569 = vmatpush3.msra.mxu1 %v4621_v55 }
 0xb7e   : > { %3552 = vmatpush3.msra.mxu0 %v4627_v62  ;;  %3570 = vmatprep.subr.mxu1 %v3849_v10 }
 0xb7f   : > { %3553 = vmatprep.subr.mxu0 %v3849_v10  ;;  %3571 = vmatpush3.msra.mxu1 %v4635_v63 }
 0xb80   : > { %3554 = vmatpush3.msra.mxu0 %v4641_v1  ;;  %3572 = vmatprep.subr.mxu1 %v3849_v10 }
 0xb81   : > { %3555 = vmatprep.subr.mxu0 %v3849_v10  ;;  %3573 = vmatpush3.msra.mxu1 %v4649_v2 }
 0xb82   : > { %3556 = vmatpush3.msra.mxu0 %v4655_v3  ;;  %3574 = vmatprep.subr.mxu1 %v3849_v10 }
 0xb83   : > { %3557 = vmatprep.subr.mxu0 %v3849_v10  ;;  %3575 = vmatpush3.msra.mxu1 %v4663_v5 }
 0xb84   : > { %3558 = vmatpush3.msra.mxu0 %v4669_v7  ;;  %3576 = vmatprep.subr.mxu1 %v3849_v10 }
 0xb85   : > { %3560 = vmatmul.mubr.msk.f32.vlgmr.msra.gmra.mxu0 %vm625_vm2, %v2104_v46  ;;  %3581 = vmatprep.subr.mxu0 %v3849_v10 }
 0xb86   : > { %3582 = vmatpush3.msra.mxu0 %v4678_v12  ;;  %3577 = vmatpush3.msra.mxu1 %v4684_v53 }
 0xb87   : > { %3583 = vmatprep.subr.mxu0 %v3849_v10  ;;  %3578 = vmatprep.mubr.msk.f32.mxu1 %vm3850_vm1, %v3849_v10 }
 0xb88   : > { %3584 = vmatpush3.msra.mxu0 %v4693_v14  ;;  %3597 = vmatprep.mubr.msk.f32.mxu0 %vm3850_vm1, %v3849_v10 }
 0xb89   : > { %3585 = vmatprep.subr.mxu0 %v3849_v10  ;;  %3600 = vmatprep.subr.mxu1 %v3849_v10 }
 0xb8a   : > { %3586 = vmatpush3.msra.mxu0 %v4703_v17 }
 0xb8b   : > { %3587 = vmatprep.subr.mxu0 %v3849_v10 }
 0xb8c   : > { %3588 = vmatpush3.msra.mxu0 %v4710_v20 }
 0xb8d   : > { %3589 = vmatprep.subr.mxu0 %v3849_v10 }
 0xb8e   : > { %3590 = vmatpush3.msra.mxu0 %v4717_v22 }
 0xb8f   : > { %3591 = vmatprep.subr.mxu0 %v3849_v10 }
 0xb90   : > { %3592 = vmatpush3.msra.mxu0 %v4724_v31 }
 0xb91   : > { %3593 = vmatprep.subr.mxu0 %v3849_v10 }
 0xb92   : > { %3594 = vmatpush3.msra.mxu0 %v4731_v35 }
 0xb93   : > { %3595 = vmatprep.subr.mxu0 %v3849_v10 }
 0xb94   : > { %3596 = vmatpush3.msra.mxu0 %v4738_v39 }
 0xb95   : > { %3619 = vmatprep.subr.mxu0 %v3849_v10 }
 0xc35   : > { %v2176_v26 = vpop.f32.mrf.mxu0  ;;  %v2246_v9 = vpop.f32.mrf.mxu1 }
 0xc36   : > { %v2320_v24 = vadd.f32 %v2176_v26, %v4260_v49  ;;  %2328 = vrot.lane.b32.xlu0 %v2246_v9, %s3851_s29 }
 0xc37   : > { %v3523_v47 = vpop.f32.mrf.mxu0  ;;  %v3542_v50 = vpop.f32.mrf.mxu1 }
 0xc38   : > { %v2921_v52 = vmul.f32 -1.442695, %v2320_v24  ;;  %v2747_v50 = vld [vmem:[%s4281_s20] sm:$0xff] (%p3947_p6) }
 0xc3a   : > { %3740 = vpow2.f32 %v2921_v52  ;;  %v2749_v52 = vld [vmem:[%s4281_s20 + $0x8] sm:$0xff] (%p3947_p6) }
 0xc45   : > { %v2316_v6 = vpop.f32.mrf.mxu0 }
 0xc46   : > { %v2317_v55 = vadd.f32 %v3786_v0, %v2316_v6  ;;  %v2751_v6 = vld [vmem:[%s4281_s20 + $0x10] sm:$0xff] (%p3947_p6) }
 0xc47   : > { %v3741_v60 = vpop.eup %3740  ;;  %v3561_v18 = vpop.f32.mrf.mxu0 }
 0xc48   : > { %v2324_v8 = vadd.f32 1.0, %v3741_v60  ;;  %v2753_v60 = vld [vmem:[%s4281_s20 + $0x18] sm:$0xff] (%p3947_p6)  ;;  %v2755_v18 = vld [vmem:[%s4281_s20 + $0x20] sm:$0xff] (%p3947_p6) }
 0xc4a   : > { %3742 = vrcp.f32 %v2324_v8  ;;  %v2757_v8 = vld [vmem:[%s4281_s20 + $0x28] sm:$0xff] (%p3947_p6) }
 0xc57   : > { %v3743_v63 = vpop.eup %3742 }
 0xc58   : > { %v2338_v2 = vmul.f32 %v3743_v63, %v2317_v55 }
 0xc5a   : > { %v2339_v5 = vadd.f32 %v2338_v2, %v4262_v51 }
 0xc5c   : > { %3744 = vtanh.f32 %v2339_v5 }
 0xc69   : > { %v3745_v12 = vpop.eup %3744 }
 0xc6a   : > { %2343 = vrot.lane.b32.xlu1 %v3745_v12, %s3851_s29 }
 0xca8   : > { %v2329_v53 = vpop.permute.xlu0 %2328 }
 0xca9   : > { %v2331_v14 = vadd.f32 %v2329_v53, %v4260_v49 }
 0xcab   : > { %v2922_v17 = vmul.f32 -1.442695, %v2331_v14 }
 0xcad   : > { %3746 = vpow2.f32 %v2922_v17 }
 0xcba   : > { %v3747_v20 = vpop.eup %3746 }
 0xcbb   : > { %v2335_v22 = vadd.f32 1.0, %v3747_v20 }
 0xcbd   : > { %3748 = vrcp.f32 %v2335_v22 }
 0xcca   : > { %v3749_v31 = vpop.eup %3748 }
 0xccb   : > { %v2341_v35 = vsub.f32 1.0, %v3749_v31  ;;  %v2347_v48 = vmul.f32 %v3749_v31, %v4749_v45 }
 0xcdc   : > { %v2344_v39 = vpop.permute.xlu1 %2343 }
 0xcdd   : > { %v2346_v43 = vmul.f32 %v2344_v39, %v2341_v35 }
 0xcdf   : > { %v4821_v51 = vadd.f32 %v2347_v48, %v2346_v43 }
 0xce1   : > { %2350 = vrot.lane.b32.xlu0 %v4821_v51, %s3851_s29 }
 0xd53   : > { %v2351_v59 = vpop.permute.xlu0 %2350 }
 0xd54   : > { %2923 = vst.msk [vmem:[%s4281_s20 + $0x30] sm:$0xff] %vm625_vm2, %v2351_v59  ;;  %3579 = vmatmul.mubr.msk.f32.vlgmr.msra.gmra.mxu1 %vm625_vm2, %v2351_v59  ;;  %3598 = vmatmul.mubr.msk.f32.vlgmr.msra.gmra.mxu0 %vm625_vm2, %v2351_v59 }
 0xd55   : > { %3601 = vmatpush3.msra.mxu1 %v4580_v15  ;;  %3616 = vmatprep.mubr.msk.f32.mxu1 %vm3850_vm1, %v3849_v10 }
 0xd56   : > { %3602 = vmatprep.subr.mxu1 %v3849_v10  ;;  %3635 = vmatprep.mubr.msk.f32.mxu0 %vm3850_vm1, %v3849_v10 }
 0xd57   : > { %3603 = vmatpush3.msra.mxu1 %v4590_v11  ;;  %3620 = vmatpush3.msra.mxu0 %v2609_v23 }
 0xd58   : > { %3604 = vmatprep.subr.mxu1 %v3849_v10  ;;  %3621 = vmatprep.subr.mxu0 %v3849_v10 }
 0xd59   : > { %3605 = vmatpush3.msra.mxu1 %v4599_v4  ;;  %3622 = vmatpush3.msra.mxu0 %v2608_v25 }
 0xd5a   : > { %3606 = vmatprep.subr.mxu1 %v3849_v10  ;;  %3623 = vmatprep.subr.mxu0 %v3849_v10 }
 0xd5b   : > { %3607 = vmatpush3.msra.mxu1 %v4613_v56  ;;  %3624 = vmatpush3.msra.mxu0 %v2607_v27 }
 0xd5c   : > { %3608 = vmatprep.subr.mxu1 %v3849_v10  ;;  %3625 = vmatprep.subr.mxu0 %v3849_v10 }
 0xd5d   : > { %3609 = vmatpush3.msra.mxu1 %v4627_v62 }
 0xd5e   : > { %3610 = vmatprep.subr.mxu1 %v3849_v10 }
 0xd5f   : > { %3611 = vmatpush3.msra.mxu1 %v4641_v1 }
 0xd60   : > { %3612 = vmatprep.subr.mxu1 %v3849_v10 }
 0xd61   : > { %3613 = vmatpush3.msra.mxu1 %v4655_v3 }
 0xd62   : > { %3614 = vmatprep.subr.mxu1 %v3849_v10 }
 0xd63   : > { %3615 = vmatpush3.msra.mxu1 %v4669_v7 }
 0xd64   : > { %3617 = vmatmul.mubr.msk.f32.vlgmr.msra.gmra.mxu1 %vm625_vm2, %v2351_v59 }
 0xe14   : > { %v2423_v49 = vpop.f32.mrf.mxu1  ;;  %v2493_v15 = vpop.f32.mrf.mxu0 }
 0xe15   : > { %v2567_v11 = vadd.f32 %v2423_v49, %v4264_v54  ;;  %2575 = vrot.lane.b32.xlu1 %v2493_v15, %s3851_s29 }
 0xe16   : > { %v3580_v4 = vpop.f32.mrf.mxu1  ;;  %v3599_v56 = vpop.f32.mrf.mxu0 }
 0xe17   : > { %v2927_v62 = vmul.f32 -1.442695, %v2567_v11 }
 0xe19   : > { %3750 = vpow2.f32 %v2927_v62 }
 0xe24   : > { %v2563_v1 = vpop.f32.mrf.mxu1 }
 0xe25   : > { %v2564_v16 = vadd.f32 %v3786_v0, %v2563_v1  ;;  %v2759_v0 = vld [vmem:[%s4281_s20 + $0x30] sm:$0xff] (%p3947_p6) }
 0xe26   : > { %v3751_v13 = vpop.eup %3750  ;;  %v3618_v57 = vpop.f32.mrf.mxu1 }
 0xe27   : > { %v2571_v3 = vadd.f32 1.0, %v3751_v13 }
 0xe29   : > { %3752 = vrcp.f32 %v2571_v3 }
 0xe36   : > { %v3753_v19 = vpop.eup %3752 }
 0xe37   : > { %v2585_v7 = vmul.f32 %v3753_v19, %v2564_v16 }
 0xe39   : > { %v2586_v21 = vadd.f32 %v2585_v7, %v4266_v58  ;;  %v2606_v58 = vld [vmem:[%s4953_s7 + $0x20] sm:$0xff] }
 0xe3a   : > { %3626 = vmatpush3.msra.mxu0 %v2606_v58 }
 0xe3b   : > { %3754 = vtanh.f32 %v2586_v21  ;;  %3627 = vmatprep.subr.mxu0 %v3849_v10 }
 0xe3c   : > { %3628 = vmatpush3.msra.mxu0 %v2605_v28 }
 0xe3d   : > { %3629 = vmatprep.subr.mxu0 %v3849_v10 }
 0xe3e   : > { %3630 = vmatpush3.msra.mxu0 %v2604_v30 }
 0xe3f   : > { %3631 = vmatprep.subr.mxu0 %v3849_v10 }
 0xe40   : > { %3632 = vmatpush3.msra.mxu0 %v2603_v32 }
 0xe41   : > { %3633 = vmatprep.subr.mxu0 %v3849_v10 }
 0xe42   : > { %3634 = vmatpush3.msra.mxu0 %v2602_v33 }
 0xe48   : > { %v3755_v29 = vpop.eup %3754 }
 0xe49   : > { %2590 = vrot.lane.b32.xlu0 %v3755_v29, %s3851_s29 }
 0xe87   : > { %v2576_v34 = vpop.permute.xlu1 %2575 }
 0xe88   : > { %v2578_v36 = vadd.f32 %v2576_v34, %v4264_v54  ;;  %v2930_v54 = vld [vmem:[%s4954_s8] ss:$0 sm:$0xff] }
 0xe8a   : > { %v2928_v37 = vmul.f32 -1.442695, %v2578_v36 }
 0xe8c   : > { %3756 = vpow2.f32 %v2928_v37 }
 0xe99   : > { %v3757_v38 = vpop.eup %3756 }
 0xe9a   : > { %v2582_v40 = vadd.f32 1.0, %v3757_v38 }
 0xe9c   : > { %3758 = vrcp.f32 %v2582_v40 }
 0xea9   : > { %v3759_v41 = vpop.eup %3758 }
 0xeaa   : > { %v2588_v61 = vsub.f32 1.0, %v3759_v41  ;;  %v2594_v44 = vmul.f32 %v3759_v41, %v4821_v51 }
 0xebb   : > { %v2591_v42 = vpop.permute.xlu0 %2590 }
 0xebc   : > { %v2593_v45 = vmul.f32 %v2591_v42, %v2588_v61 }
 0xebe   : > { %v2595_v46 = vadd.f32 %v2594_v44, %v2593_v45 }
 0xec0   : > { %2597 = vrot.lane.b32.xlu1 %v2595_v46, %s3851_s29  ;;  %s2934_s29 = sshll.u32 (%p3947_p6), %s3929_s17, 3 }
 0xec1   : > { %s2704_s21 = scalar_lea.vmem (%p3947_p6), %s4955_s9, %s2934_s29 }
 0xec2   : > { %2748 = vst [vmem:[%s2704_s21] sm:$0xff] (%p3947_p6), %v2747_v50  ;;  %2750 = vst [vmem:[%s2704_s21 + $0x10] sm:$0xff] (%p3947_p6), %v2749_v52 }
 0xec3   : > { %2752 = vst [vmem:[%s2704_s21 + $0x20] sm:$0xff] (%p3947_p6), %v2751_v6  ;;  %2754 = vst [vmem:[%s2704_s21 + $0x30] sm:$0xff] (%p3947_p6), %v2753_v60 }
 0xec4   : > { %2756 = vst [vmem:[%s2704_s21 + $0x40] sm:$0xff] (%p3947_p6), %v2755_v18  ;;  %2758 = vst [vmem:[%s2704_s21 + $0x50] sm:$0xff] (%p3947_p6), %v2757_v8 }
 0xec5   : > { %2760 = vst [vmem:[%s2704_s21 + $0x60] sm:$0xff] (%p3947_p6), %v2759_v0 }
 0xf32   : > { %v2598_v10 = vpop.permute.xlu1 %2597 }
 0xf33   : > { %2929 = vst.msk [vmem:[%s4281_s20 + $0x38] sm:$0xff] %vm625_vm2, %v2598_v10  ;;  %3636 = vmatmul.mubr.msk.f32.vlgmr.msra.gmra.mxu0 %vm625_vm2, %v2598_v10 }
 0xf3a   : > { %v2761_v55 = vld [vmem:[%s4281_s20 + $0x38] sm:$0xff] (%p3947_p6) }
 0xf3b   : > { %2762 = vst [vmem:[%s2704_s21 + $0x70] sm:$0xff] (%p3947_p6), %v2761_v55 }
 0xff3   : > { %v2685_v26 = vpop.f32.mrf.mxu0 }
 0xff4   : > { %v2686_v9 = vadd.f32 %v2930_v54, %v2685_v26 }
 0xff5   : > { %v3637_v24 = vpop.f32.mrf.mxu0 }
 0xff6   : > { %3760 = vtanh.f32 %v2686_v9 }
0x1000   : > { %2702 = sbr.rel (!%p3947_p6) target bundleno = 4101 (0x1005), region = 98 }
0x1003   : > { %v3761_v47 = vpop.eup %3760 }
0x1004   : > { %2690 = vst.msk [vmem:[%s427_s28] sm:$0xff] %vm456_vm0, %v3761_v47 }
0x1005 PF: > { %s2935_s26 = sshll.u32 %s3929_s17, 7  ;;  %s2775_s27 = sshll.u32 %s427_s28, 4  ;;  %s2776_s27 = int_to_ptr.vmem [resolvable:$true] %s2775_s27 }
0x1006   : > { %s2773_s18 = scalar_lea.hbm %s4956_s10, %s2935_s26  ;;  %s3787_s12 = scalar_lea.vmem %s2776_s27, 128 }
0x1007   : > { %p3788_p13 = scmp.ne.s32.totalorder %s2776_s27, %s3787_s12  ;;  %s3852_s11 = smov [#allocation4]  }
0x1008   : > { %s3791_s0 = sshll.u32 %s3852_s11, 4  ;;  %s3792_s0 = int_to_ptr.vmem [resolvable:$false] %s3791_s0 }
0x1009   : > { %p3789_p0 = pnand %p3788_p13, %p3947_p6  ;;  %s3793_s20 = scalar_lea.vmem %s3792_s0, 256 }
0x100a   : > { %p3794_p2 = scmp.lt.s32.totalorder %s2776_s27, %s3792_s0  ;;  %p3795_p3 = scmp.lt.s32.totalorder %s3793_s20, %s3787_s12 }
0x100b   : > { %p3790_p1 = pneg %p3789_p0 }
0x100c   : > { %p3796_p4 = por %p3795_p3, %p3794_p2 }
0x100e   : > { %p3797_p5 = pnand %p3796_p4, %p3790_p1 }
0x1010   : > { %3800 = shalt.err (!%p3797_p5)
}
0x1011   : > { %s3801_s17 = scalar_lea.hbm %s2773_s18, 128  ;;  %s3805_s26 = scalar_lea.hbm %s4956_s10, 256 }
0x1012   : > { %p3802_p7 = scmp.ne.s32.totalorder %s2773_s18, %s3801_s17  ;;  %p3806_p12 = scmp.lt.s32.totalorder %s2773_s18, %s4956_s10 }
0x1013   : > { %p3807_p13 = scmp.lt.s32.totalorder %s3805_s26, %s3801_s17 }
0x1014   : > { %p3803_p10 = pnand %p3802_p7, %p3947_p6 }
0x1015   : > { %p3808_p0 = por %p3807_p13, %p3806_p12 }
0x1016   : > { %p3804_p11 = pneg %p3803_p10 }
0x1018   : > { %p3809_p9 = pnand %p3808_p0, %p3804_p11 }
0x101a   : > { %3812 = shalt.err (!%p3809_p9)
}
0x101b   : > { %s4962_s0 = scalar_lea.sflag [#allocation5], %s3974_s25 }
0x101c   : > { %3638 = dma.vmem_to_hbm [thread:$0]  (%p3947_p6), %s2776_s27, 128, %s2773_s18, %s4962_s0  }
0x101d PF: > { %s2794_s11 = sand.u32 1, %s3835_s13   ;;  %p4963_p1 = scmp.ge.s32.totalorder %s3847_s16, 2 }
0x101e   : > { %s2795_s12 = scalar_lea.sflag [#allocation5], %s2794_s11 }
0x101f   : > { %p3641_p2 = pnand %p4963_p1, %p3951_p8 }
0x1021   : > { %p3642_p3 = pneg %p3641_p2 }
0x1023   : > { %3830 = dma.done.wait (%p3642_p3), %s2795_s12, 128  }
0x1024   : > { %3832 = vsyncadd (%p3642_p3), %s2795_s12, 4294967168  ;;  %p21_p9 = scmp.ge.s32.totalorder %s3933_s19, 4   ;;  %s4964_s13 = smov %s3839_s14 }
0x1025   : > { %s4965_s14 = smov %s3843_s15  ;;  %s4966_s15 = smov %s3945_s22 }
0x1026   : > { %s4967_s16 = smov %s3933_s19  ;;  %23 = sbr.rel (!%p21_p9) target bundleno = 5 (0x5), region = 191 }
0x102b   :  { %2800 = vsyncpa [#allocation5], 1 }
0x102c   :  { %2802 = vsyncpa [#allocation5 + $0x1], 1 }

</bundles_post_ra>
